<compile_context>
chip_gen: v6e
topology: v6e:2x2x1
jax: 0.10.0
libtpu: 0.0.40
codegen_flags: <defaults>
</compile_context>

<pallas_src>
import math

import jax
import jax.numpy as jnp
from jax.experimental import pallas as pl
from jax.experimental.pallas import tpu as pltpu

# Original (PyTorch) dims
IN_DIM, H1, H2, H3, OUT_DIM = 140, 300, 500, 500, 34
# Lane-aligned padded dims (multiples of 128)
IN_PAD, H1_PAD, H2_PAD, H3_PAD, OUT_PAD = 256, 384, 512, 512, 128

TB_MAX = 512  # batch tile size; ~85% pipelining efficiency, fits v7x VMEM


def _round_up(n, m):
    return ((n + m - 1) // m) * m


def _mlp_kernel(x_ref,
                w1_ref, b1_ref,
                w2_ref, b2_ref,
                w3_ref, b3_ref,
                w4_ref, b4_ref,
                o_ref):
    """Fused 4-layer MLP forward on one (TB, IN_PAD) batch tile."""
    # bf16 MXU operands, f32 accumulation; elementwise stays f32.
    x = x_ref[...].astype(jnp.bfloat16)

    # layer 1: Linear + ReLU   (Dropout = identity in eval mode)
    z = jnp.dot(x, w1_ref[...], preferred_element_type=jnp.float32) + b1_ref[...]
    z = jnp.maximum(z, 0.0)

    # layer 2: Linear + ReLU
    z = jnp.dot(z.astype(jnp.bfloat16), w2_ref[...],
                preferred_element_type=jnp.float32) + b2_ref[...]
    z = jnp.maximum(z, 0.0)

    # layer 3: Linear + ReLU
    z = jnp.dot(z.astype(jnp.bfloat16), w3_ref[...],
                preferred_element_type=jnp.float32) + b3_ref[...]
    z = jnp.maximum(z, 0.0)

    # output head: Linear + Sigmoid (exp + approx reciprocal -> EUP slots)
    c = jnp.dot(z.astype(jnp.bfloat16), w4_ref[...],
                preferred_element_type=jnp.float32) + b4_ref[...]
    o_ref[...] = pl.reciprocal(1.0 + jnp.exp(-c), approx=True).astype(o_ref.dtype)


def regression_forward(x, prepared_params):
    """x: [bs, ...] -> flattened to [bs, 140] (mirrors x.view(bs, -1))."""
    bs = x.shape[0]
    x2d = x.reshape(bs, -1).astype(jnp.float32)
    assert x2d.shape[1] == IN_DIM

    # Batch tiling: pad batch to a multiple of the tile size.
    tb = TB_MAX if bs >= TB_MAX else _round_up(max(bs, 1), 8)
    bs_pad = _round_up(bs, tb)
    xp = jnp.zeros((bs_pad, IN_PAD), jnp.float32).at[:bs, :IN_DIM].set(x2d)

    (w1, b1), (w2, b2), (w3, b3), (w4, b4) = prepared_params

    def resident(shape):
        # weights/biases stay VMEM-resident across all batch tiles
        return pl.BlockSpec(shape, lambda i: (0, 0))

    out = pl.pallas_call(
        _mlp_kernel,
        out_shape=jax.ShapeDtypeStruct((bs_pad, OUT_PAD), jnp.float32),
        grid=(bs_pad // tb,),
        in_specs=[
            pl.BlockSpec((tb, IN_PAD), lambda i: (i, 0)),
            resident((IN_PAD, H1_PAD)), resident((1, H1_PAD)),
            resident((H1_PAD, H2_PAD)), resident((1, H2_PAD)),
            resident((H2_PAD, H3_PAD)), resident((1, H3_PAD)),
            resident((H3_PAD, OUT_PAD)), resident((1, OUT_PAD)),
        ],
        out_specs=pl.BlockSpec((tb, OUT_PAD), lambda i: (i, 0)),
        compiler_params=pltpu.CompilerParams(
            dimension_semantics=("parallel",)),
    )(xp, w1, b1, w2, b2, w3, b3, w4, b4)

    # Drop padded batch rows and padded output lanes (sigmoid(0)=0.5 there).
    return out[:bs, :OUT_DIM]


# ----------------------------- parameters ---------------------------------

def _xavier_uniform(key, fan_in, fan_out):
    """Matches nn.init.xavier_uniform_ (gain=1). Returned as [in, out]."""
    bound = math.sqrt(6.0 / (fan_in + fan_out))
    w = jax.random.uniform(key, (fan_out, fan_in), jnp.float32, -bound, bound)
    return jnp.asarray(w.T)


def init_params(key):
    """Unpadded f32 params, [in, out] weight layout (equiv. to PyTorch W.T)."""
    k1, k2, k3, k4 = jax.random.split(key, 4)
    return (
        (_xavier_uniform(k1, IN_DIM, H1), jnp.zeros((1, H1), jnp.float32)),
        (_xavier_uniform(k2, H1, H2),     jnp.zeros((1, H2), jnp.float32)),
        (_xavier_uniform(k3, H2, H3),     jnp.zeros((1, H3), jnp.float32)),
        (_xavier_uniform(k4, H3, OUT_DIM), jnp.zeros((1, OUT_DIM), jnp.float32)),
    )


def _pad2d(a, rows, cols):
    return jnp.zeros((rows, cols), a.dtype).at[:a.shape[0], :a.shape[1]].set(a)


def prepare_params(params):
    """Zero-pad to lane-aligned shapes; weights -> bf16, biases stay f32."""
    (w1, b1), (w2, b2), (w3, b3), (w4, b4) = params
    return (
        (_pad2d(w1, IN_PAD, H1_PAD).astype(jnp.bfloat16), _pad2d(b1, 1, H1_PAD)),
        (_pad2d(w2, H1_PAD, H2_PAD).astype(jnp.bfloat16), _pad2d(b2, 1, H2_PAD)),
        (_pad2d(w3, H2_PAD, H3_PAD).astype(jnp.bfloat16), _pad2d(b3, 1, H3_PAD)),
        (_pad2d(w4, H3_PAD, OUT_PAD).astype(jnp.bfloat16), _pad2d(b4, 1, OUT_PAD)),
    )


def _reference_forward(x, params):
    """Plain-JAX f32 reference for correctness checking."""
    z = x.reshape(x.shape[0], -1).astype(jnp.float32)
    for i, (w, b) in enumerate(params):
        z = z @ w + b
        if i < 3:
            z = jnp.maximum(z, 0.0)
    return jax.nn.sigmoid(z)


if __name__ == "__main__":
    key = jax.random.PRNGKey(0)
    pkey, xkey = jax.random.split(key)

    params = init_params(pkey)
    prepared = prepare_params(params)

    batch = 2
    x = jax.random.normal(xkey, (batch, IN_DIM), jnp.float32)

    out = regression_forward(x, prepared)
    out = jax.block_until_ready(out)

    ref = _reference_forward(x, params)
    assert out.shape == (batch, OUT_DIM), out.shape
    # bf16 matmul operands (f32 accumulate) vs f32 reference -> loose tolerance
    assert jnp.allclose(out, ref, atol=2e-2, rtol=2e-2), (
        float(jnp.max(jnp.abs(out - ref))))
    assert bool(jnp.all(jnp.isfinite(out)))

    print("KERNEL_OK")
</pallas_src>

<mosaic_0001>
module attributes {stable_mosaic.version = 11 : i64} {
  func.func @_mlp_kernel(%arg0: i32, %arg1: memref<8x256xf32, #tpu.memory_space<vmem>>, %arg2: memref<256x384xbf16, #tpu.memory_space<vmem>>, %arg3: memref<1x384xf32, #tpu.memory_space<vmem>>, %arg4: memref<384x512xbf16, #tpu.memory_space<vmem>>, %arg5: memref<1x512xf32, #tpu.memory_space<vmem>>, %arg6: memref<512x512xbf16, #tpu.memory_space<vmem>>, %arg7: memref<1x512xf32, #tpu.memory_space<vmem>>, %arg8: memref<512x128xbf16, #tpu.memory_space<vmem>>, %arg9: memref<1x128xf32, #tpu.memory_space<vmem>>, %arg10: memref<8x128xf32, #tpu.memory_space<vmem>>) attributes {dimension_semantics = [#tpu.dimension_semantics<parallel>], iteration_bounds = array<i64: 1>, scalar_prefetch = 0 : i64, scratch_operands = 0 : i64, tpu.core_type = #tpu.core_type<tc>, window_params = [{transform_indices = @transform_0, window_bounds = array<i64: 8, 256>}, {pipeline_mode = #tpu.pipeline_mode<synchronous>, transform_indices = @transform_1, window_bounds = array<i64: 256, 384>}, {pipeline_mode = #tpu.pipeline_mode<synchronous>, transform_indices = @transform_2, window_bounds = array<i64: 1, 384>}, {pipeline_mode = #tpu.pipeline_mode<synchronous>, transform_indices = @transform_3, window_bounds = array<i64: 384, 512>}, {pipeline_mode = #tpu.pipeline_mode<synchronous>, transform_indices = @transform_4, window_bounds = array<i64: 1, 512>}, {pipeline_mode = #tpu.pipeline_mode<synchronous>, transform_indices = @transform_5, window_bounds = array<i64: 512, 512>}, {pipeline_mode = #tpu.pipeline_mode<synchronous>, transform_indices = @transform_6, window_bounds = array<i64: 1, 512>}, {pipeline_mode = #tpu.pipeline_mode<synchronous>, transform_indices = @transform_7, window_bounds = array<i64: 512, 128>}, {pipeline_mode = #tpu.pipeline_mode<synchronous>, transform_indices = @transform_8, window_bounds = array<i64: 1, 128>}, {transform_indices = @transform_9, window_bounds = array<i64: 8, 128>}]} {
    %c0 = arith.constant 0 : index
    %c0_0 = arith.constant 0 : index
    %0 = vector.load %arg1[%c0, %c0_0] : memref<8x256xf32, #tpu.memory_space<vmem>>, vector<8x256xf32>
    %1 = arith.truncf %0 : vector<8x256xf32> to vector<8x256xbf16>
    %c0_1 = arith.constant 0 : index
    %c0_2 = arith.constant 0 : index
    %2 = vector.load %arg2[%c0_1, %c0_2] : memref<256x384xbf16, #tpu.memory_space<vmem>>, vector<256x384xbf16>
    %cst = arith.constant dense<0.000000e+00> : vector<8x384xf32>
    %3 = tpu.matmul %1, %2, %cst {dimension_numbers = #tpu.dot_dimension_numbers<[1], [0], [0], [1], [0, 0, 1, 1], [], []>} : vector<8x256xbf16>, vector<256x384xbf16>, vector<8x384xf32> -> vector<8x384xf32>
    %c0_3 = arith.constant 0 : index
    %c0_4 = arith.constant 0 : index
    %4 = vector.load %arg3[%c0_3, %c0_4] : memref<1x384xf32, #tpu.memory_space<vmem>>, vector<1x384xf32>
    %5 = vector.broadcast %4 : vector<1x384xf32> to vector<8x384xf32>
    %6 = arith.addf %3, %5 : vector<8x384xf32>
    %cst_5 = arith.constant 0.000000e+00 : f32
    %7 = vector.broadcast %cst_5 : f32 to vector<8x384xf32>
    %8 = arith.maximumf %6, %7 : vector<8x384xf32>
    %9 = arith.truncf %8 : vector<8x384xf32> to vector<8x384xbf16>
    %c0_6 = arith.constant 0 : index
    %c0_7 = arith.constant 0 : index
    %10 = vector.load %arg4[%c0_6, %c0_7] : memref<384x512xbf16, #tpu.memory_space<vmem>>, vector<384x512xbf16>
    %cst_8 = arith.constant dense<0.000000e+00> : vector<8x512xf32>
    %11 = tpu.matmul %9, %10, %cst_8 {dimension_numbers = #tpu.dot_dimension_numbers<[1], [0], [0], [1], [0, 0, 1, 1], [], []>} : vector<8x384xbf16>, vector<384x512xbf16>, vector<8x512xf32> -> vector<8x512xf32>
    %c0_9 = arith.constant 0 : index
    %c0_10 = arith.constant 0 : index
    %12 = vector.load %arg5[%c0_9, %c0_10] : memref<1x512xf32, #tpu.memory_space<vmem>>, vector<1x512xf32>
    %13 = vector.broadcast %12 : vector<1x512xf32> to vector<8x512xf32>
    %14 = arith.addf %11, %13 : vector<8x512xf32>
    %cst_11 = arith.constant 0.000000e+00 : f32
    %15 = vector.broadcast %cst_11 : f32 to vector<8x512xf32>
    %16 = arith.maximumf %14, %15 : vector<8x512xf32>
    %17 = arith.truncf %16 : vector<8x512xf32> to vector<8x512xbf16>
    %c0_12 = arith.constant 0 : index
    %c0_13 = arith.constant 0 : index
    %18 = vector.load %arg6[%c0_12, %c0_13] : memref<512x512xbf16, #tpu.memory_space<vmem>>, vector<512x512xbf16>
    %cst_14 = arith.constant dense<0.000000e+00> : vector<8x512xf32>
    %19 = tpu.matmul %17, %18, %cst_14 {dimension_numbers = #tpu.dot_dimension_numbers<[1], [0], [0], [1], [0, 0, 1, 1], [], []>} : vector<8x512xbf16>, vector<512x512xbf16>, vector<8x512xf32> -> vector<8x512xf32>
    %c0_15 = arith.constant 0 : index
    %c0_16 = arith.constant 0 : index
    %20 = vector.load %arg7[%c0_15, %c0_16] : memref<1x512xf32, #tpu.memory_space<vmem>>, vector<1x512xf32>
    %21 = vector.broadcast %20 : vector<1x512xf32> to vector<8x512xf32>
    %22 = arith.addf %19, %21 : vector<8x512xf32>
    %cst_17 = arith.constant 0.000000e+00 : f32
    %23 = vector.broadcast %cst_17 : f32 to vector<8x512xf32>
    %24 = arith.maximumf %22, %23 : vector<8x512xf32>
    %25 = arith.truncf %24 : vector<8x512xf32> to vector<8x512xbf16>
    %c0_18 = arith.constant 0 : index
    %c0_19 = arith.constant 0 : index
    %26 = vector.load %arg8[%c0_18, %c0_19] : memref<512x128xbf16, #tpu.memory_space<vmem>>, vector<512x128xbf16>
    %cst_20 = arith.constant dense<0.000000e+00> : vector<8x128xf32>
    %27 = tpu.matmul %25, %26, %cst_20 {dimension_numbers = #tpu.dot_dimension_numbers<[1], [0], [0], [1], [0, 0, 1, 1], [], []>} : vector<8x512xbf16>, vector<512x128xbf16>, vector<8x128xf32> -> vector<8x128xf32>
    %c0_21 = arith.constant 0 : index
    %c0_22 = arith.constant 0 : index
    %28 = vector.load %arg9[%c0_21, %c0_22] : memref<1x128xf32, #tpu.memory_space<vmem>>, vector<1x128xf32>
    %29 = vector.broadcast %28 : vector<1x128xf32> to vector<8x128xf32>
    %30 = arith.addf %27, %29 : vector<8x128xf32>
    %cst_23 = arith.constant 0.000000e+00 : f32
    %31 = vector.broadcast %cst_23 : f32 to vector<8x128xf32>
    %32 = arith.subf %31, %30 : vector<8x128xf32>
    %33 = math.exp %32 : vector<8x128xf32>
    %cst_24 = arith.constant 1.000000e+00 : f32
    %34 = vector.broadcast %cst_24 : f32 to vector<8x128xf32>
    %35 = arith.addf %34, %33 : vector<8x128xf32>
    %36 = tpu.reciprocal %35 {approx = true} : vector<8x128xf32> -> vector<8x128xf32>
    %c0_25 = arith.constant 0 : index
    %c0_26 = arith.constant 0 : index
    %37 = vector.load %arg10[%c0_25, %c0_26] : memref<8x128xf32, #tpu.memory_space<vmem>>, vector<8x128xf32>
    tpu.vector_store %arg10[%c0_25, %c0_26], %36 {strides = array<i32>} : memref<8x128xf32, #tpu.memory_space<vmem>>, vector<8x128xf32>,
    return
  }
  func.func @transform_0(%arg0: i32) -> (i32, i32) {
    %c0_i32 = arith.constant 0 : i32
    %c0_i32_0 = arith.constant 0 : i32
    return %arg0, %c0_i32 : i32, i32
  }
  func.func @transform_1(%arg0: i32) -> (i32, i32) {
    %c0_i32 = arith.constant 0 : i32
    %c0_i32_0 = arith.constant 0 : i32
    %c0_i32_1 = arith.constant 0 : i32
    return %c0_i32, %c0_i32_0 : i32, i32
  }
  func.func @transform_2(%arg0: i32) -> (i32, i32) {
    %c0_i32 = arith.constant 0 : i32
    %c0_i32_0 = arith.constant 0 : i32
    %c0_i32_1 = arith.constant 0 : i32
    return %c0_i32, %c0_i32_0 : i32, i32
  }
  func.func @transform_3(%arg0: i32) -> (i32, i32) {
    %c0_i32 = arith.constant 0 : i32
    %c0_i32_0 = arith.constant 0 : i32
    %c0_i32_1 = arith.constant 0 : i32
    return %c0_i32, %c0_i32_0 : i32, i32
  }
  func.func @transform_4(%arg0: i32) -> (i32, i32) {
    %c0_i32 = arith.constant 0 : i32
    %c0_i32_0 = arith.constant 0 : i32
    %c0_i32_1 = arith.constant 0 : i32
    return %c0_i32, %c0_i32_0 : i32, i32
  }
  func.func @transform_5(%arg0: i32) -> (i32, i32) {
    %c0_i32 = arith.constant 0 : i32
    %c0_i32_0 = arith.constant 0 : i32
    %c0_i32_1 = arith.constant 0 : i32
    return %c0_i32, %c0_i32_0 : i32, i32
  }
  func.func @transform_6(%arg0: i32) -> (i32, i32) {
    %c0_i32 = arith.constant 0 : i32
    %c0_i32_0 = arith.constant 0 : i32
    %c0_i32_1 = arith.constant 0 : i32
    return %c0_i32, %c0_i32_0 : i32, i32
  }
  func.func @transform_7(%arg0: i32) -> (i32, i32) {
    %c0_i32 = arith.constant 0 : i32
    %c0_i32_0 = arith.constant 0 : i32
    %c0_i32_1 = arith.constant 0 : i32
    return %c0_i32, %c0_i32_0 : i32, i32
  }
  func.func @transform_8(%arg0: i32) -> (i32, i32) {
    %c0_i32 = arith.constant 0 : i32
    %c0_i32_0 = arith.constant 0 : i32
    %c0_i32_1 = arith.constant 0 : i32
    return %c0_i32, %c0_i32_0 : i32, i32
  }
  func.func @transform_9(%arg0: i32) -> (i32, i32) {
    %c0_i32 = arith.constant 0 : i32
    %c0_i32_0 = arith.constant 0 : i32
    return %arg0, %c0_i32 : i32, i32
  }
}

</mosaic_0001>

<bundles_post_ra>
// kernel: tpu_custom_call.1
= control target key start
LH: loop header
LB: loop body
LE: loop exit
PB: predicated region body
PF: predicated region fallthrough
CT: control target
= control target key end

     0   :  { %14 = vsyncpa [#allocation3], 0  ;;  %s3753_s0 = inlined_call_operand.hbm [shape: f32[8,256], index: 0, kind: input, shape index: {}]   ;;  %s3754_s1 = inlined_call_operand.hbm [shape: bf16[256,384], index: 1, kind: input, shape index: {}]   ;;  %s3755_s2 = inlined_call_operand.hbm [shape: f32[1,384], index: 2, kind: input, shape index: {}]   ;;  %s3756_s3 = inlined_call_operand.hbm [shape: bf16[384,512], index: 3, kind: input, shape index: {}]   ;;  %s3757_s4 = inlined_call_operand.vmem [shape: f32[1,512], index: 4, kind: input, shape index: {}]   ;;  %s3758_s5 = inlined_call_operand.hbm [shape: bf16[512,512], index: 5, kind: input, shape index: {}]   ;;  %s3759_s6 = inlined_call_operand.vmem [shape: f32[1,512], index: 6, kind: input, shape index: {}]   ;;  %s3760_s7 = inlined_call_operand.hbm [shape: bf16[512,128], index: 7, kind: input, shape index: {}]   ;;  %s3761_s8 = inlined_call_operand.vmem [shape: f32[1,128], index: 8, kind: input, shape index: {}]   ;;  %s3762_s9 = inlined_call_operand.hbm [shape: f32[8,128], index: 9, kind: output, shape index: {}]  }
   0x1   :  { %15 = vsyncpa [#allocation6], 0 }
   0x2   :  { %16 = vsyncpa [#allocation9], 0 }
   0x3   :  { %17 = vsyncpa [#allocation12], 0 }
   0x4   :  { %18 = vsyncpa [#allocation4], 0  ;;  %s3610_s30 = smov [#allocation5]  }
   0x5   :  { %s34_s10 = sshll.u32 %s3610_s30, 4  ;;  %s35_s10 = int_to_ptr.vmem [resolvable:$true] %s34_s10 }
   0x6   :  { %s3468_s11 = scalar_lea.vmem %s35_s10, 6144  ;;  %p3473_p1 = scmp.lt.s32.totalorder %s35_s10, %s35_s10 }
   0x7   :  { %p3469_p0 = scmp.ne.s32.totalorder %s35_s10, %s3468_s11  ;;  %p3474_p2 = scmp.lt.s32.totalorder %s3468_s11, %s3468_s11 }
   0x9   :  { %p3475_p3 = por %p3474_p2, %p3473_p1 }
   0xb   :  { %p3476_p4 = pnand %p3475_p3, %p3469_p0 }
   0xd   :  { %3479 = shalt.err (!%p3476_p4)
}
   0xe   :  { %s3611_s12 = smov 192   ;;  %s3612_s13 = smov 12  }
   0xf   :  { %40 = dma.hbm_to_vmem [thread:$0]  %s3754_s1, 6144, %s35_s10, [#allocation6], %s3611_s12, %s3611_s12, %s3612_s13  }
  0x10   :  { %s3613_s16 = smov [#allocation8]  }
  0x11   :  { %s56_s17 = sshll.u32 %s3613_s16, 4  ;;  %s57_s17 = int_to_ptr.vmem [resolvable:$true] %s56_s17 }
  0x12   :  { %s3488_s18 = scalar_lea.vmem %s57_s17, 12288  ;;  %p3493_p6 = scmp.lt.s32.totalorder %s57_s17, %s57_s17 }
  0x13   :  { %p3489_p5 = scmp.ne.s32.totalorder %s57_s17, %s3488_s18  ;;  %p3494_p7 = scmp.lt.s32.totalorder %s3488_s18, %s3488_s18 }
  0x15   :  { %p3495_p8 = por %p3494_p7, %p3493_p6 }
  0x17   :  { %p3496_p9 = pnand %p3495_p8, %p3489_p5 }
  0x19   :  { %3499 = shalt.err (!%p3496_p9)
}
  0x1a   :  { %s3614_s19 = smov 256   ;;  %s3615_s20 = smov 16  }
  0x1b   :  { %62 = dma.hbm_to_vmem [thread:$0]  %s3756_s3, 12288, %s57_s17, [#allocation9], %s3614_s19, %s3614_s19, %s3615_s20  }
  0x1c   :  { %s3616_s1 = smov [#allocation2]   ;;  %s3617_s24 = smov [#allocation7]  }
  0x1d   :  { %s25_s23 = sshll.u32 %s3616_s1, 4  ;;  %s47_s25 = sshll.u32 %s3617_s24, 4  ;;  %s26_s23 = int_to_ptr.vmem [resolvable:$true] %s25_s23  ;;  %s48_s25 = int_to_ptr.vmem [resolvable:$true] %s47_s25 }
  0x1e   :  { %s3508_s26 = scalar_lea.vmem %s26_s23, 256  ;;  %p3513_p11 = scmp.lt.s32.totalorder %s26_s23, %s26_s23 }
  0x1f   :  { %p3509_p10 = scmp.ne.s32.totalorder %s26_s23, %s3508_s26  ;;  %p3514_p12 = scmp.lt.s32.totalorder %s3508_s26, %s3508_s26 }
  0x21   :  { %p3515_p13 = por %p3514_p12, %p3513_p11 }
  0x23   :  { %p3516_p0 = pnand %p3515_p13, %p3509_p10 }
  0x25   :  { %3519 = shalt.err (!%p3516_p0)
}
  0x26   :  { %28 = dma.hbm_to_vmem [thread:$0]  %s3753_s0, 256, %s26_s23, [#allocation3]  }
  0x27   :  { %s3528_s29 = scalar_lea.vmem %s48_s25, 48  ;;  %s3532_s3 = scalar_lea.vmem %s48_s25, 64 }
  0x28   :  { %p3529_p1 = scmp.ne.s32.totalorder %s48_s25, %s3528_s29  ;;  %p3533_p2 = scmp.lt.s32.totalorder %s48_s25, %s48_s25 }
  0x29   :  { %p3534_p3 = scmp.lt.s32.totalorder %s3532_s3, %s3528_s29 }
  0x2b   :  { %p3535_p4 = por %p3534_p3, %p3533_p2 }
  0x2d   :  { %p3536_p5 = pnand %p3535_p4, %p3529_p1 }
  0x2f   :  { %3539 = shalt.err (!%p3536_p5)
}
  0x30   :  { %50 = dma.hbm_to_vmem [thread:$0]  %s3755_s2, 48, %s48_s25, [#allocation6]  }
  0x31   :  { %s3618_s11 = smov [#allocation10]   ;;  %s3619_s13 = smov [#allocation11]  }
  0x32   :  { %s70_s12 = sshll.u32 %s3618_s11, 4  ;;  %s84_s14 = sshll.u32 %s3619_s13, 4  ;;  %s71_s12 = int_to_ptr.vmem [resolvable:$true] %s70_s12  ;;  %s85_s14 = int_to_ptr.vmem [resolvable:$true] %s84_s14 }
  0x33   :  { %s3548_s15 = scalar_lea.vmem %s71_s12, 16384  ;;  %p3553_p7 = scmp.lt.s32.totalorder %s71_s12, %s71_s12 }
  0x34   :  { %p3549_p6 = scmp.ne.s32.totalorder %s71_s12, %s3548_s15  ;;  %p3554_p8 = scmp.lt.s32.totalorder %s3548_s15, %s3548_s15 }
  0x36   :  { %p3555_p9 = por %p3554_p8, %p3553_p7 }
  0x38   :  { %p3556_p10 = pnand %p3555_p9, %p3549_p6 }
  0x3a   :  { %3559 = shalt.err (!%p3556_p10)
}
  0x3b   :  { %76 = dma.hbm_to_vmem [thread:$0]  %s3758_s5, 16384, %s71_s12, [#allocation9], %s3614_s19, %s3614_s19, %s3615_s20  }
  0x3c   :  { %s3568_s2 = scalar_lea.vmem %s85_s14, 4096  ;;  %p3573_p12 = scmp.lt.s32.totalorder %s85_s14, %s85_s14 }
  0x3d   :  { %p3569_p11 = scmp.ne.s32.totalorder %s85_s14, %s3568_s2  ;;  %p3574_p13 = scmp.lt.s32.totalorder %s3568_s2, %s3568_s2 }
  0x3f   :  { %p3575_p0 = por %p3574_p13, %p3573_p12 }
  0x41   :  { %p3576_p1 = pnand %p3575_p0, %p3569_p11 }
  0x43   :  { %3579 = shalt.err (!%p3576_p1)
}
  0x44   :  { %s3620_s17 = smov 64   ;;  %s3621_s18 = smov 4  }
  0x45   :  { %90 = dma.hbm_to_vmem [thread:$0]  %s3760_s7, 4096, %s85_s14, [#allocation12], %s3620_s17, %s3620_s17, %s3621_s18  }
  0x46   :  { %3600 = dma.done.wait [#allocation3], 256  }
  0x47   :  { %3601 = vsyncadd [#allocation3], 4294967040 }
  0x48   :  { %3602 = dma.done.wait [#allocation6], 6192  }
  0x49   :  { %3603 = vsyncadd [#allocation6], 4294961104 }
  0x4a   :  { %3604 = dma.done.wait [#allocation9], 28672  }
  0x4b   :  { %3605 = vsyncadd [#allocation9], 4294938624 }
  0x4c   :  { %3606 = dma.done.wait [#allocation12], 4096  }
  0x4d   :  { %3607 = vsyncadd [#allocation12], 4294963200  ;;  %v3024_v0 = vld [vmem:[#allocation5 + $0xac] ss:$12 sps:$4 sm:$0xff]   ;;  %v3026_v1 = vld [vmem:[#allocation5 + $0x170] ss:$12 sps:$4 sm:$0xff]  }
  0x4e   :  { %453 = vmatprep.subr.bf16.mxu0 %v3024_v0  ;;  %v3027_v2 = vld [vmem:[#allocation5 + $0xa8] ss:$12 sps:$4 sm:$0xff]   ;;  %2944 = vmatprep.subr.bf16.mxu1 %v3026_v1  ;;  %v3028_v3 = vld [vmem:[#allocation5 + $0xb0] ss:$12 sps:$4 sm:$0xff]   ;;  %v3031_v5 = vld [vmem:[#allocation5 + $0x158] ss:$12 sps:$4 sm:$0xff]  }
  0x4f   :  { %454 = vmatpush1.bf16.msra.mxu0 %v3027_v2  ;;  %v3029_v4 = vld [vmem:[#allocation5 + $0x94] ss:$12 sps:$4 sm:$0xff]   ;;  %2945 = vmatpush3.bf16.msra.mxu1 %v3028_v3  ;;  %v3032_v6 = vld [vmem:[#allocation5 + $0x90] ss:$12 sps:$4 sm:$0xff]   ;;  %v3033_v7 = vld [vmem:[#allocation5 + $0x98] ss:$12 sps:$4 sm:$0xff]  }
  0x50   :  { %455 = vmatprep.subr.bf16.mxu0 %v3029_v4  ;;  %2946 = vmatprep.subr.bf16.mxu1 %v3031_v5  ;;  %v3034_v8 = vld [vmem:[#allocation5 + $0x7c] ss:$12 sps:$4 sm:$0xff]   ;;  %v3036_v9 = vld [vmem:[#allocation5 + $0x140] ss:$12 sps:$4 sm:$0xff]   ;;  %v3037_v10 = vld [vmem:[#allocation5 + $0x78] ss:$12 sps:$4 sm:$0xff]  }
  0x51   :  { %v3038_v11 = vld [vmem:[#allocation5 + $0x80] ss:$12 sps:$4 sm:$0xff]   ;;  %v3039_v12 = vld [vmem:[#allocation5 + $0x64] ss:$12 sps:$4 sm:$0xff]   ;;  %v3041_v13 = vld [vmem:[#allocation5 + $0x128] ss:$12 sps:$4 sm:$0xff]  }
  0x52   :  { %v3042_v14 = vld [vmem:[#allocation5 + $0x60] ss:$12 sps:$4 sm:$0xff]   ;;  %v3043_v15 = vld [vmem:[#allocation5 + $0x68] ss:$12 sps:$4 sm:$0xff]   ;;  %v3046_v17 = vld [vmem:[#allocation5 + $0x110] ss:$12 sps:$4 sm:$0xff]  }
  0x53   :  { %456 = vmatpush1.bf16.msra.mxu0 %v3032_v6  ;;  %2947 = vmatpush3.bf16.msra.mxu1 %v3033_v7  ;;  %v3044_v16 = vld [vmem:[#allocation5 + $0x4c] ss:$12 sps:$4 sm:$0xff]   ;;  %v3047_v18 = vld [vmem:[#allocation5 + $0x48] ss:$12 sps:$4 sm:$0xff]   ;;  %v3048_v19 = vld [vmem:[#allocation5 + $0x50] ss:$12 sps:$4 sm:$0xff]  }
  0x54   :  { %457 = vmatprep.subr.bf16.mxu0 %v3034_v8  ;;  %2948 = vmatprep.subr.bf16.mxu1 %v3036_v9  ;;  %v3049_v20 = vld [vmem:[#allocation5 + $0x34] ss:$12 sps:$4 sm:$0xff]   ;;  %v3051_v21 = vld [vmem:[#allocation5 + $0xf8] ss:$12 sps:$4 sm:$0xff]   ;;  %v3052_v22 = vld [vmem:[#allocation5 + $0x30] ss:$12 sps:$4 sm:$0xff]  }
  0x55   :  { %v3053_v23 = vld [vmem:[#allocation5 + $0x38] ss:$12 sps:$4 sm:$0xff]   ;;  %v3054_v24 = vld [vmem:[#allocation5 + $0x1c] ss:$12 sps:$4 sm:$0xff]   ;;  %v3056_v25 = vld [vmem:[#allocation5 + $0xe0] ss:$12 sps:$4 sm:$0xff]  }
  0x56   :  { %v3057_v26 = vld [vmem:[#allocation5 + $0x18] ss:$12 sps:$4 sm:$0xff]   ;;  %v3058_v27 = vld [vmem:[#allocation5 + $0x20] ss:$12 sps:$4 sm:$0xff]   ;;  %v3061_v29 = vld [vmem:[#allocation5 + $0xc8] ss:$12 sps:$4 sm:$0xff]  }
  0x57   :  { %458 = vmatpush1.bf16.msra.mxu0 %v3037_v10  ;;  %2949 = vmatpush3.bf16.msra.mxu1 %v3038_v11  ;;  %v3059_v28 = vld [vmem:[#allocation5 + $0x4] ss:$12 sps:$4 sm:$0xff]   ;;  %v113_v30 = vld [vmem:[#allocation2 + $0x8] sm:$0xff]  ;;  %v3062_v32 = vld [vmem:[#allocation5] ss:$12 sps:$4 sm:$0xff]   ;;  %s3623_s1 = smov [#allocation13]  }
  0x58   :  { %459 = vmatprep.subr.bf16.mxu0 %v3039_v12  ;;  %2950 = vmatprep.subr.bf16.mxu1 %v3041_v13  ;;  %v115_v31 = vpack.c.bf16 %v113_v30, %v113_v30  ;;  %v3063_v33 = vld [vmem:[#allocation5 + $0x8] ss:$12 sps:$4 sm:$0xff]   ;;  %v3064_v34 = vld [vmem:[#allocation5 + $0x16c] ss:$12 sps:$4 sm:$0xff]   ;;  %v3069_v39 = vld [vmem:[#allocation5 + $0x150] ss:$12 sps:$4 sm:$0xff]  }
  0x59   :  { %v112_v35 = vld [vmem:[#allocation2] sm:$0xff]  ;;  %v3070_v40 = vld [vmem:[#allocation5 + $0x13c] ss:$12 sps:$4 sm:$0xff]   ;;  %v3072_v43 = vld [vmem:[#allocation5 + $0x138] ss:$12 sps:$4 sm:$0xff]   ;;  %s2627_s23 = sshll.u32 %s3623_s1, 4  ;;  %s2628_s23 = int_to_ptr.vmem [resolvable:$true] %s2627_s23 }
  0x5a   :  { %526 = vmatprep.mubr.bf16.mxu1 %v115_v31  ;;  %485 = vmatprep.mubr.bf16.mxu0 %v115_v31  ;;  %v114_v36 = vpack.c.bf16 %v112_v35, %v112_v35  ;;  %v3066_v37 = vld [vmem:[#allocation5 + $0x168] ss:$12 sps:$4 sm:$0xff]   ;;  %v3073_v44 = vld [vmem:[#allocation5 + $0x124] ss:$12 sps:$4 sm:$0xff]   ;;  %v3075_v47 = vld [vmem:[#allocation5 + $0x120] ss:$12 sps:$4 sm:$0xff]   ;;  %p3585_p3 = scmp.lt.s32.totalorder %s2628_s23, %s2628_s23 }
  0x5b   :  { %460 = vmatpush1.bf16.msra.mxu0 %v3042_v14  ;;  %2951 = vmatpush3.bf16.msra.mxu1 %v3043_v15  ;;  %v3067_v38 = vld [vmem:[#allocation5 + $0x154] ss:$12 sps:$4 sm:$0xff]   ;;  %v3090_v42 = vld [vmem:[#allocation8 + $0xe4] ss:$16 sps:$4 sm:$0xff]   ;;  %v3081_v56 = vld [vmem:[#allocation5 + $0xf0] ss:$12 sps:$4 sm:$0xff]  }
  0x5c   :  { %461 = vmatprep.subr.bf16.mxu0 %v3044_v16  ;;  %2952 = vmatprep.subr.bf16.mxu1 %v3046_v17  ;;  %v3088_v41 = vld [vmem:[#allocation8 + $0xe0] ss:$16 sps:$4 sm:$0xff]   ;;  %v3096_v45 = vld [vmem:[#allocation8 + $0xc4] ss:$16 sps:$4 sm:$0xff]   ;;  %v3087_v63 = vld [vmem:[#allocation5 + $0xc0] ss:$12 sps:$4 sm:$0xff]  }
  0x5d   :  { %v3094_v46 = vld [vmem:[#allocation8 + $0xc0] ss:$16 sps:$4 sm:$0xff]   ;;  %v3102_v48 = vld [vmem:[#allocation8 + $0xa4] ss:$16 sps:$4 sm:$0xff]   ;;  %s3580_s24 = scalar_lea.vmem %s2628_s23, 128 }
  0x5e   :  { %v3076_v49 = vld [vmem:[#allocation5 + $0x10c] ss:$12 sps:$4 sm:$0xff]   ;;  %v3100_v50 = vld [vmem:[#allocation8 + $0xa0] ss:$16 sps:$4 sm:$0xff]   ;;  %v3082_v57 = vld [vmem:[#allocation5 + $0xdc] ss:$12 sps:$4 sm:$0xff]   ;;  %p3581_p2 = scmp.ne.s32.totalorder %s2628_s23, %s3580_s24  ;;  %p3586_p4 = scmp.lt.s32.totalorder %s3580_s24, %s3580_s24 }
  0x5f   :  { %462 = vmatpush1.bf16.msra.mxu0 %v3047_v18  ;;  %2953 = vmatpush3.bf16.msra.mxu1 %v3048_v19  ;;  %v3108_v51 = vld [vmem:[#allocation8 + $0x84] ss:$16 sps:$4 sm:$0xff]   ;;  %v3079_v53 = vld [vmem:[#allocation5 + $0xf4] ss:$12 sps:$4 sm:$0xff]   ;;  %v3085_v61 = vld [vmem:[#allocation5 + $0xc4] ss:$12 sps:$4 sm:$0xff]  }
  0x60   :  { %463 = vmatprep.subr.bf16.mxu0 %v3049_v20  ;;  %2954 = vmatprep.subr.bf16.mxu1 %v3051_v21  ;;  %v3078_v52 = vld [vmem:[#allocation5 + $0x108] ss:$12 sps:$4 sm:$0xff]   ;;  %v3084_v60 = vld [vmem:[#allocation5 + $0xd8] ss:$12 sps:$4 sm:$0xff]   ;;  %p3587_p5 = por %p3586_p4, %p3585_p3 }
  0x61   :  { %v3106_v54 = vld [vmem:[#allocation8 + $0x80] ss:$16 sps:$4 sm:$0xff]   ;;  %v3114_v55 = vld [vmem:[#allocation8 + $0x64] ss:$16 sps:$4 sm:$0xff]  }
  0x62   :  { %v3112_v58 = vld [vmem:[#allocation8 + $0x60] ss:$16 sps:$4 sm:$0xff]   ;;  %v3120_v59 = vld [vmem:[#allocation8 + $0x44] ss:$16 sps:$4 sm:$0xff]   ;;  %p3588_p6 = pnand %p3587_p5, %p3581_p2 }
  0x63   :  { %464 = vmatpush1.bf16.msra.mxu0 %v3052_v22  ;;  %2955 = vmatpush3.bf16.msra.mxu1 %v3053_v23  ;;  %v3118_v62 = vld [vmem:[#allocation8 + $0x40] ss:$16 sps:$4 sm:$0xff]   ;;  %v3093_v0 = vld [vmem:[#allocation8 + $0x2e4] ss:$16 sps:$4 sm:$0xff]   ;;  %v3141_v22 = vld [vmem:[#allocation8 + $0xec] ss:$16 sps:$4 sm:$0xff]  }
  0x64   :  { %465 = vmatprep.subr.bf16.mxu0 %v3054_v24  ;;  %2956 = vmatprep.subr.bf16.mxu1 %v3056_v25  ;;  %v3091_v1 = vld [vmem:[#allocation8 + $0x2e0] ss:$16 sps:$4 sm:$0xff]   ;;  %v3099_v2 = vld [vmem:[#allocation8 + $0x2c4] ss:$16 sps:$4 sm:$0xff]   ;;  %v3622_v23 = vmov 0  }
  0x65   :  { %v3097_v3 = vld [vmem:[#allocation8 + $0x2c0] ss:$16 sps:$4 sm:$0xff]   ;;  %v3105_v4 = vld [vmem:[#allocation8 + $0x2a4] ss:$16 sps:$4 sm:$0xff]  }
  0x66   :  { %v3103_v5 = vld [vmem:[#allocation8 + $0x2a0] ss:$16 sps:$4 sm:$0xff]   ;;  %v3111_v6 = vld [vmem:[#allocation8 + $0x284] ss:$16 sps:$4 sm:$0xff]  }
  0x67   :  { %466 = vmatpush1.bf16.msra.mxu0 %v3057_v26  ;;  %2957 = vmatpush3.bf16.msra.mxu1 %v3058_v27  ;;  %v3109_v7 = vld [vmem:[#allocation8 + $0x280] ss:$16 sps:$4 sm:$0xff]   ;;  %v3117_v8 = vld [vmem:[#allocation8 + $0x264] ss:$16 sps:$4 sm:$0xff]  }
  0x68   :  { %467 = vmatprep.subr.bf16.mxu0 %v3059_v28  ;;  %2958 = vmatprep.subr.bf16.mxu1 %v3061_v29  ;;  %v3115_v9 = vld [vmem:[#allocation8 + $0x260] ss:$16 sps:$4 sm:$0xff]   ;;  %v3123_v10 = vld [vmem:[#allocation8 + $0x244] ss:$16 sps:$4 sm:$0xff]  }
  0x69   :  { %v3121_v11 = vld [vmem:[#allocation8 + $0x240] ss:$16 sps:$4 sm:$0xff]   ;;  %v3126_v12 = vld [vmem:[#allocation8 + $0x24] ss:$16 sps:$4 sm:$0xff]  }
  0x6a   :  { %v3124_v13 = vld [vmem:[#allocation8 + $0x20] ss:$16 sps:$4 sm:$0xff]   ;;  %v3129_v14 = vld [vmem:[#allocation8 + $0x224] ss:$16 sps:$4 sm:$0xff]  }
  0x6b   :  { %468 = vmatpush1.bf16.msra.mxu0 %v3062_v32  ;;  %2959 = vmatpush3.bf16.msra.mxu1 %v3063_v33  ;;  %v3127_v15 = vld [vmem:[#allocation8 + $0x220] ss:$16 sps:$4 sm:$0xff]   ;;  %v3132_v16 = vld [vmem:[#allocation8 + $0x4] ss:$16 sps:$4 sm:$0xff]  }
  0x6c   :  { %469 = vmatprep.subr.bf16.mxu0 %v3064_v34  ;;  %1138 = vmatprep.subr.bf16.mxu1 %v3090_v42  ;;  %v3130_v17 = vld [vmem:[#allocation8] ss:$16 sps:$4 sm:$0xff]   ;;  %v3135_v18 = vld [vmem:[#allocation8 + $0x204] ss:$16 sps:$4 sm:$0xff]   ;;  %v180_v42 = vld [vmem:[#allocation7] sm:$0x7] }
  0x6d   :  { %v3133_v19 = vld [vmem:[#allocation8 + $0x200] ss:$16 sps:$4 sm:$0xff]   ;;  %v3138_v20 = vld [vmem:[#allocation8 + $0x1e4] ss:$16 sps:$4 sm:$0xff]  }
  0x6e   :  { %527 = vmatmul.mubr.bf16.vlgmr.msra.gmra.mxu1 %v114_v36  ;;  %v3136_v21 = vld [vmem:[#allocation8 + $0x1e0] ss:$16 sps:$4 sm:$0xff]   ;;  %v3144_v25 = vld [vmem:[#allocation8 + $0x1c4] ss:$16 sps:$4 sm:$0xff]  }
  0x6f   :  { %470 = vmatpush2.bf16.msra.mxu0 %v3066_v37  ;;  %1139 = vmatpush1.bf16.msra.mxu1 %v3088_v41  ;;  %v3142_v24 = vld [vmem:[#allocation8 + $0x1c0] ss:$16 sps:$4 sm:$0xff]   ;;  %v3150_v27 = vld [vmem:[#allocation8 + $0x1a4] ss:$16 sps:$4 sm:$0xff]  }
  0x70   :  { %471 = vmatprep.subr.bf16.mxu0 %v3067_v38  ;;  %1140 = vmatprep.subr.bf16.mxu1 %v3096_v45  ;;  %v3148_v26 = vld [vmem:[#allocation8 + $0x1a0] ss:$16 sps:$4 sm:$0xff]   ;;  %v3156_v29 = vld [vmem:[#allocation8 + $0x184] ss:$16 sps:$4 sm:$0xff]   ;;  %v3186_v38 = vld [vmem:[#allocation8 + $0x2ec] ss:$16 sps:$4 sm:$0xff]  }
  0x71   :  { %v3154_v28 = vld [vmem:[#allocation8 + $0x180] ss:$16 sps:$4 sm:$0xff]   ;;  %v3162_v31 = vld [vmem:[#allocation8 + $0x164] ss:$16 sps:$4 sm:$0xff]  }
  0x72   :  { %v3160_v30 = vld [vmem:[#allocation8 + $0x160] ss:$16 sps:$4 sm:$0xff]   ;;  %v3168_v33 = vld [vmem:[#allocation8 + $0x144] ss:$16 sps:$4 sm:$0xff]  }
  0x73   :  { %472 = vmatpush2.bf16.msra.mxu0 %v3069_v39  ;;  %1141 = vmatpush1.bf16.msra.mxu1 %v3094_v46  ;;  %v3166_v32 = vld [vmem:[#allocation8 + $0x140] ss:$16 sps:$4 sm:$0xff]   ;;  %v3174_v34 = vld [vmem:[#allocation8 + $0x124] ss:$16 sps:$4 sm:$0xff]   ;;  %v182_v39 = vlaneseq }
  0x74   :  { %473 = vmatprep.subr.bf16.mxu0 %v3070_v40  ;;  %1142 = vmatprep.subr.bf16.mxu1 %v3102_v48  ;;  %v3172_v35 = vld [vmem:[#allocation8 + $0x120] ss:$16 sps:$4 sm:$0xff]  }
  0x75   :  { %v3178_v37 = vld [vmem:[#allocation8 + $0x100] ss:$16 sps:$4 sm:$0xff]   ;;  %v3699_v40 = vshrl.u32 %v182_v39, 7  ;;  %v3222_v39 = vld [vmem:[#allocation8 + $0x22c] ss:$16 sps:$4 sm:$0xff]  }
  0x77   :  { %474 = vmatpush2.bf16.msra.mxu0 %v3072_v43  ;;  %1143 = vmatpush1.bf16.msra.mxu1 %v3100_v50  ;;  %v3702_v41 = vsub.s32 2, %v3699_v40 }
  0x78   :  { %475 = vmatprep.subr.bf16.mxu0 %v3073_v44  ;;  %1144 = vmatprep.subr.bf16.mxu1 %v3108_v51  ;;  %v3139_v51 = vld [vmem:[#allocation8 + $0xe8] ss:$16 sps:$4 sm:$0xff]  }
  0x79   :  { %v193_v44 = vrot.slane %v180_v42, %v3702_v41 }
  0x7b   :  { %476 = vmatpush2.bf16.msra.mxu0 %v3075_v47  ;;  %1145 = vmatpush1.bf16.msra.mxu1 %v3106_v54  ;;  %v3145_v54 = vld [vmem:[#allocation8 + $0xc8] ss:$16 sps:$4 sm:$0xff]  }
  0x7c   :  { %477 = vmatprep.subr.bf16.mxu0 %v3076_v49  ;;  %1146 = vmatprep.subr.bf16.mxu1 %v3114_v55  ;;  %v3153_v55 = vld [vmem:[#allocation8 + $0xac] ss:$16 sps:$4 sm:$0xff]  }
  0x7f   :  { %478 = vmatpush2.bf16.msra.mxu0 %v3078_v52  ;;  %1147 = vmatpush1.bf16.msra.mxu1 %v3112_v58  ;;  %v3157_v58 = vld [vmem:[#allocation8 + $0x88] ss:$16 sps:$4 sm:$0xff]  }
  0x80   :  { %479 = vmatprep.subr.bf16.mxu0 %v3079_v53  ;;  %1148 = vmatprep.subr.bf16.mxu1 %v3120_v59  ;;  %v3147_v53 = vld [vmem:[#allocation8 + $0xcc] ss:$16 sps:$4 sm:$0xff]  }
  0x81   :  { %v3165_v59 = vld [vmem:[#allocation8 + $0x6c] ss:$16 sps:$4 sm:$0xff]  }
  0x83   :  { %480 = vmatpush2.bf16.msra.mxu0 %v3081_v56  ;;  %1149 = vmatpush1.bf16.msra.mxu1 %v3118_v62  ;;  %v3151_v56 = vld [vmem:[#allocation8 + $0xa8] ss:$16 sps:$4 sm:$0xff]   ;;  %v3171_v62 = vld [vmem:[#allocation8 + $0x4c] ss:$16 sps:$4 sm:$0xff]  }
  0x84   :  { %481 = vmatprep.subr.bf16.mxu0 %v3082_v57  ;;  %1150 = vmatprep.subr.bf16.mxu1 %v3126_v12  ;;  %v3159_v57 = vld [vmem:[#allocation8 + $0x8c] ss:$16 sps:$4 sm:$0xff]  }
  0x87   :  { %482 = vmatpush2.bf16.msra.mxu0 %v3084_v60  ;;  %1151 = vmatpush1.bf16.msra.mxu1 %v3124_v13  ;;  %v3163_v60 = vld [vmem:[#allocation8 + $0x68] ss:$16 sps:$4 sm:$0xff]  }
  0x88   :  { %483 = vmatprep.subr.bf16.mxu0 %v3085_v61  ;;  %1152 = vmatprep.subr.bf16.mxu1 %v3132_v16  ;;  %v3709_v61 = vsub.s32 0, %v3699_v40  ;;  %v3181_v13 = vld [vmem:[#allocation8 + $0x8] ss:$16 sps:$4 sm:$0xff]   ;;  %v3189_v16 = vld [vmem:[#allocation8 + $0x1ec] ss:$16 sps:$4 sm:$0xff]  }
  0x8b   :  { %484 = vmatpush2.bf16.msra.mxu0 %v3087_v63  ;;  %1153 = vmatpush1.bf16.msra.mxu1 %v3130_v17  ;;  %v3712_v63 = vsub.s32 1, %v3699_v40 }
  0x8c   :  { %1179 = vmatprep.subr.bf16.mxu0 %v3093_v0  ;;  %1154 = vmatprep.subr.bf16.mxu1 %v3138_v20  ;;  %v3169_v0 = vld [vmem:[#allocation8 + $0x48] ss:$16 sps:$4 sm:$0xff]  }
  0x8d   :  { %v3187_v20 = vld [vmem:[#allocation8 + $0x1e8] ss:$16 sps:$4 sm:$0xff]  }
  0x8e   :  { %486 = vmatmul.mubr.bf16.vlgmr.msra.gmra.mxu0 %v114_v36  ;;  %v3180_v36 = vld [vmem:[#allocation8 + $0x104] ss:$16 sps:$4 sm:$0xff]  }
  0x8f   :  { %1180 = vmatpush1.bf16.msra.mxu0 %v3091_v1  ;;  %1155 = vmatpush2.bf16.msra.mxu1 %v3136_v21  ;;  %v185_v1 = vrot.slane %v180_v42, %v3709_v61  ;;  %v3195_v21 = vld [vmem:[#allocation8 + $0x1cc] ss:$16 sps:$4 sm:$0xff]  }
  0x90   :  { %1181 = vmatprep.subr.bf16.mxu0 %v3099_v2  ;;  %1211 = vmatprep.mubr.bf16.mxu0 %v3622_v23  ;;  %v3177_v2 = vld [vmem:[#allocation8 + $0x2c] ss:$16 sps:$4 sm:$0xff]  }
  0x91   :  { %1156 = vmatprep.subr.bf16.mxu1 %v3144_v25  ;;  %v3193_v25 = vld [vmem:[#allocation8 + $0x1c8] ss:$16 sps:$4 sm:$0xff]  }
  0x93   :  { %1182 = vmatpush1.bf16.msra.mxu0 %v3097_v3  ;;  %1157 = vmatpush2.bf16.msra.mxu1 %v3142_v24  ;;  %v189_v3 = vrot.slane %v180_v42, %v3712_v63  ;;  %v3198_v24 = vld [vmem:[#allocation8 + $0x2ac] ss:$16 sps:$4 sm:$0xff]   ;;  %v3217_v42 = vld [vmem:[#allocation8 + $0x148] ss:$16 sps:$4 sm:$0xff]  }
  0x94   :  { %1183 = vmatprep.subr.bf16.mxu0 %v3105_v4  ;;  %1158 = vmatprep.subr.bf16.mxu1 %v3150_v27  ;;  %v3196_v27 = vld [vmem:[#allocation8 + $0x2a8] ss:$16 sps:$4 sm:$0xff]  }
  0x97   :  { %1184 = vmatpush1.bf16.msra.mxu0 %v3103_v5  ;;  %1159 = vmatpush2.bf16.msra.mxu1 %v3148_v26  ;;  %v3201_v26 = vld [vmem:[#allocation8 + $0x1ac] ss:$16 sps:$4 sm:$0xff]  }
  0x98   :  { %1185 = vmatprep.subr.bf16.mxu0 %v3111_v6  ;;  %1160 = vmatprep.subr.bf16.mxu1 %v3156_v29  ;;  %v3175_v6 = vld [vmem:[#allocation8 + $0x28] ss:$16 sps:$4 sm:$0xff]  }
  0x99   :  { %v3199_v29 = vld [vmem:[#allocation8 + $0x1a8] ss:$16 sps:$4 sm:$0xff]  }
  0x9b   :  { %1186 = vmatpush1.bf16.msra.mxu0 %v3109_v7  ;;  %1161 = vmatpush2.bf16.msra.mxu1 %v3154_v28  ;;  %v3204_v28 = vld [vmem:[#allocation8 + $0x28c] ss:$16 sps:$4 sm:$0xff]  }
  0x9c   :  { %1187 = vmatprep.subr.bf16.mxu0 %v3117_v8  ;;  %1162 = vmatprep.subr.bf16.mxu1 %v3162_v31  ;;  %v3183_v8 = vld [vmem:[#allocation8 + $0xc] ss:$16 sps:$4 sm:$0xff]   ;;  %v3202_v31 = vld [vmem:[#allocation8 + $0x288] ss:$16 sps:$4 sm:$0xff]  }
  0x9f   :  { %1188 = vmatpush1.bf16.msra.mxu0 %v3115_v9  ;;  %1163 = vmatpush2.bf16.msra.mxu1 %v3160_v30  ;;  %v3207_v30 = vld [vmem:[#allocation8 + $0x18c] ss:$16 sps:$4 sm:$0xff]  }
  0xa0   :  { %1189 = vmatprep.subr.bf16.mxu0 %v3123_v10  ;;  %1164 = vmatprep.subr.bf16.mxu1 %v3168_v33  ;;  %v3205_v33 = vld [vmem:[#allocation8 + $0x188] ss:$16 sps:$4 sm:$0xff]  }
  0xa3   :  { %1190 = vmatpush1.bf16.msra.mxu0 %v3121_v11  ;;  %1165 = vmatpush2.bf16.msra.mxu1 %v3166_v32  ;;  %v3210_v32 = vld [vmem:[#allocation8 + $0x26c] ss:$16 sps:$4 sm:$0xff]  }
  0xa4   :  { %1191 = vmatprep.subr.bf16.mxu0 %v3129_v14  ;;  %1166 = vmatprep.subr.bf16.mxu1 %v3174_v34  ;;  %v3208_v34 = vld [vmem:[#allocation8 + $0x268] ss:$16 sps:$4 sm:$0xff]  }
  0xa7   :  { %1192 = vmatpush1.bf16.msra.mxu0 %v3127_v15  ;;  %1167 = vmatpush2.bf16.msra.mxu1 %v3172_v35  ;;  %v3216_v35 = vld [vmem:[#allocation8 + $0x24c] ss:$16 sps:$4 sm:$0xff]  }
  0xa8   :  { %1193 = vmatprep.subr.bf16.mxu0 %v3135_v18  ;;  %1168 = vmatprep.subr.bf16.mxu1 %v3180_v36  ;;  %v3184_v18 = vld [vmem:[#allocation8 + $0x2e8] ss:$16 sps:$4 sm:$0xff]  }
  0xa9   :  { %v3211_v36 = vld [vmem:[#allocation8 + $0x168] ss:$16 sps:$4 sm:$0xff]  }
  0xab   :  { %1194 = vmatpush1.bf16.msra.mxu0 %v3133_v19  ;;  %1169 = vmatpush2.bf16.msra.mxu1 %v3178_v37  ;;  %v3192_v19 = vld [vmem:[#allocation8 + $0x2cc] ss:$16 sps:$4 sm:$0xff]  }
  0xac   :  { %1220 = vmatprep.subr.bf16.mxu0 %v3141_v22  ;;  %1261 = vmatprep.subr.bf16.mxu1 %v3186_v38  ;;  %v3190_v22 = vld [vmem:[#allocation8 + $0x2c8] ss:$16 sps:$4 sm:$0xff]   ;;  %v3219_v37 = vld [vmem:[#allocation8 + $0x14c] ss:$16 sps:$4 sm:$0xff]  }
  0xad   :  { %v3214_v38 = vld [vmem:[#allocation8 + $0x248] ss:$16 sps:$4 sm:$0xff]  }
 0x12e   :  { %v2960_v43 = vpop.f32.mrf.mxu1 }
 0x130   :  { %v2961_v45 = vpop.f32.mrf.mxu1 }
 0x131   :  { %v2962_v46 = vadd.f32 %v2961_v45, %v2960_v43  ;;  %v3225_v43 = vld [vmem:[#allocation8 + $0x12c] ss:$16 sps:$4 sm:$0xff]  }
 0x132   :  { %v2963_v47 = vpop.f32.mrf.mxu1  ;;  %v3228_v45 = vld [vmem:[#allocation8 + $0x20c] ss:$16 sps:$4 sm:$0xff]  }
 0x133   :  { %v529_v48 = vadd.f32 %v2962_v46, %v193_v44  ;;  %v3220_v44 = vld [vmem:[#allocation8 + $0x228] ss:$16 sps:$4 sm:$0xff]   ;;  %v3231_v47 = vld [vmem:[#allocation8 + $0x10c] ss:$16 sps:$4 sm:$0xff]  }
 0x134   :  { %v2964_v49 = vpop.f32.mrf.mxu1  ;;  %v3223_v46 = vld [vmem:[#allocation8 + $0x128] ss:$16 sps:$4 sm:$0xff]  }
 0x135   :  { %v536_v50 = vmax.f32 %v529_v48, 0.0  ;;  %v3226_v48 = vld [vmem:[#allocation8 + $0x208] ss:$16 sps:$4 sm:$0xff]   ;;  %v3234_v49 = vld [vmem:[#allocation10 + $0xe4] ss:$16 sps:$4 sm:$0xff]  }
 0x137   :  { %v3705_v52 = vpack.c.bf16 %v536_v50, %v536_v50  ;;  %v3229_v50 = vld [vmem:[#allocation8 + $0x108] ss:$16 sps:$4 sm:$0xff]  }
 0x139   :  { %1212 = vmatmul.mubr.bf16.vlgmr.msra.gmra.mxu0 %v3705_v52 }
 0x13a   :  { %1221 = vmatpush1.bf16.msra.mxu0 %v3139_v51  ;;  %v3232_v51 = vld [vmem:[#allocation10 + $0xe0] ss:$16 sps:$4 sm:$0xff]  }
 0x13b   :  { %1222 = vmatprep.subr.bf16.mxu0 %v3147_v53  ;;  %v3237_v53 = vld [vmem:[#allocation10 + $0xc4] ss:$16 sps:$4 sm:$0xff]  }
 0x13e   :  { %1223 = vmatpush1.bf16.msra.mxu0 %v3145_v54  ;;  %v3235_v54 = vld [vmem:[#allocation10 + $0xc0] ss:$16 sps:$4 sm:$0xff]  }
 0x13f   :  { %1224 = vmatprep.subr.bf16.mxu0 %v3153_v55  ;;  %v3240_v55 = vld [vmem:[#allocation10 + $0xa4] ss:$16 sps:$4 sm:$0xff]  }
 0x142   :  { %1225 = vmatpush1.bf16.msra.mxu0 %v3151_v56  ;;  %v3238_v56 = vld [vmem:[#allocation10 + $0xa0] ss:$16 sps:$4 sm:$0xff]  }
 0x143   :  { %1226 = vmatprep.subr.bf16.mxu0 %v3159_v57  ;;  %v3243_v57 = vld [vmem:[#allocation10 + $0x84] ss:$16 sps:$4 sm:$0xff]  }
 0x146   :  { %1227 = vmatpush1.bf16.msra.mxu0 %v3157_v58  ;;  %v3241_v58 = vld [vmem:[#allocation10 + $0x80] ss:$16 sps:$4 sm:$0xff]  }
 0x147   :  { %1228 = vmatprep.subr.bf16.mxu0 %v3165_v59  ;;  %v3259_v59 = vld [vmem:[#allocation10 + $0x2e0] ss:$16 sps:$4 sm:$0xff]  }
 0x14a   :  { %1229 = vmatpush1.bf16.msra.mxu0 %v3163_v60  ;;  %v3261_v60 = vld [vmem:[#allocation10 + $0x2e4] ss:$16 sps:$4 sm:$0xff]  }
 0x14b   :  { %1230 = vmatprep.subr.bf16.mxu0 %v3171_v62  ;;  %v3246_v62 = vld [vmem:[#allocation10 + $0x64] ss:$16 sps:$4 sm:$0xff]  }
 0x14e   :  { %v487_v4 = vpop.f32.mrf.mxu0  ;;  %1231 = vmatpush1.bf16.msra.mxu0 %v3169_v0  ;;  %v3267_v0 = vld [vmem:[#allocation10 + $0x2c4] ss:$16 sps:$4 sm:$0xff]  }
 0x14f   :  { %v488_v5 = vadd.f32 %v487_v4, %v185_v1  ;;  %1232 = vmatprep.subr.bf16.mxu0 %v3177_v2  ;;  %v3244_v1 = vld [vmem:[#allocation10 + $0x60] ss:$16 sps:$4 sm:$0xff]   ;;  %v3273_v2 = vld [vmem:[#allocation10 + $0x2a4] ss:$16 sps:$4 sm:$0xff]  }
 0x150   :  { %v489_v7 = vpop.f32.mrf.mxu0  ;;  %v3271_v4 = vld [vmem:[#allocation10 + $0x2a0] ss:$16 sps:$4 sm:$0xff]  }
 0x151   :  { %v534_v9 = vmax.f32 %v488_v5, 0.0  ;;  %v490_v10 = vadd.f32 %v489_v7, %v189_v3  ;;  %v3249_v3 = vld [vmem:[#allocation10 + $0x44] ss:$16 sps:$4 sm:$0xff]   ;;  %v3247_v5 = vld [vmem:[#allocation10 + $0x40] ss:$16 sps:$4 sm:$0xff]  }
 0x152   :  { %v491_v11 = vpop.f32.mrf.mxu0  ;;  %1233 = vmatpush1.bf16.msra.mxu0 %v3175_v6  ;;  %v3279_v6 = vld [vmem:[#allocation10 + $0x284] ss:$16 sps:$4 sm:$0xff]  }
 0x153   :  { %v535_v12 = vmax.f32 %v490_v10, 0.0  ;;  %v3716_v14 = vpack.c.bf16 %v534_v9, %v534_v9  ;;  %1234 = vmatprep.subr.bf16.mxu0 %v3183_v8  ;;  %v3252_v7 = vld [vmem:[#allocation10 + $0x24] ss:$16 sps:$4 sm:$0xff]   ;;  %v3277_v8 = vld [vmem:[#allocation10 + $0x280] ss:$16 sps:$4 sm:$0xff]  }
 0x154   :  { %v492_v15 = vpop.f32.mrf.mxu0  ;;  %v3250_v9 = vld [vmem:[#allocation10 + $0x20] ss:$16 sps:$4 sm:$0xff]   ;;  %v3285_v10 = vld [vmem:[#allocation10 + $0x264] ss:$16 sps:$4 sm:$0xff]  }
 0x155   :  { %v538_v17 = vpack.c.bf16 %v535_v12, %v535_v12  ;;  %v3255_v11 = vld [vmem:[#allocation10 + $0x4] ss:$16 sps:$4 sm:$0xff]   ;;  %v3283_v12 = vld [vmem:[#allocation10 + $0x260] ss:$16 sps:$4 sm:$0xff]  }
 0x156   :  { %1235 = vmatpush1.bf16.msra.mxu0 %v3181_v13  ;;  %v3253_v13 = vld [vmem:[#allocation10] ss:$16 sps:$4 sm:$0xff]   ;;  %v3258_v15 = vld [vmem:[#allocation10 + $0x1e4] ss:$16 sps:$4 sm:$0xff]  }
 0x157   :  { %1170 = vmatprep.mubr.bf16.mxu1 %v538_v17  ;;  %1236 = vmatprep.subr.bf16.mxu0 %v3189_v16  ;;  %v3289_v16 = vld [vmem:[#allocation10 + $0x240] ss:$16 sps:$4 sm:$0xff]  }
 0x158   :  { %1171 = vmatmul.mubr.bf16.vlgmr.msra.gmra.mxu1 %v3716_v14  ;;  %1252 = vmatprep.mubr.bf16.mxu0 %v538_v17  ;;  %v3256_v17 = vld [vmem:[#allocation10 + $0x1e0] ss:$16 sps:$4 sm:$0xff]  }
 0x159   :  { %1262 = vmatpush1.bf16.msra.mxu1 %v3184_v18  ;;  %1293 = vmatprep.mubr.bf16.mxu1 %v3622_v23  ;;  %v3213_v23 = vld [vmem:[#allocation8 + $0x16c] ss:$16 sps:$4 sm:$0xff]   ;;  %v3264_v18 = vld [vmem:[#allocation10 + $0x1c4] ss:$16 sps:$4 sm:$0xff]  }
 0x15a   :  { %1263 = vmatprep.subr.bf16.mxu1 %v3192_v19  ;;  %1237 = vmatpush2.bf16.msra.mxu0 %v3187_v20  ;;  %v3262_v19 = vld [vmem:[#allocation10 + $0x1c0] ss:$16 sps:$4 sm:$0xff]   ;;  %v3270_v20 = vld [vmem:[#allocation10 + $0x1a4] ss:$16 sps:$4 sm:$0xff]  }
 0x15b   :  { %1238 = vmatprep.subr.bf16.mxu0 %v3195_v21  ;;  %v3297_v21 = vld [vmem:[#allocation10 + $0x224] ss:$16 sps:$4 sm:$0xff]  }
 0x15d   :  { %1264 = vmatpush1.bf16.msra.mxu1 %v3190_v22  ;;  %v3295_v22 = vld [vmem:[#allocation10 + $0x220] ss:$16 sps:$4 sm:$0xff]  }
 0x15e   :  { %1265 = vmatprep.subr.bf16.mxu1 %v3198_v24  ;;  %1239 = vmatpush2.bf16.msra.mxu0 %v3193_v25  ;;  %v3268_v24 = vld [vmem:[#allocation10 + $0x1a0] ss:$16 sps:$4 sm:$0xff]   ;;  %v3276_v25 = vld [vmem:[#allocation10 + $0x184] ss:$16 sps:$4 sm:$0xff]  }
 0x15f   :  { %1240 = vmatprep.subr.bf16.mxu0 %v3201_v26  ;;  %v3303_v26 = vld [vmem:[#allocation10 + $0x204] ss:$16 sps:$4 sm:$0xff]  }
 0x161   :  { %1266 = vmatpush1.bf16.msra.mxu1 %v3196_v27  ;;  %v3301_v27 = vld [vmem:[#allocation10 + $0x200] ss:$16 sps:$4 sm:$0xff]  }
 0x162   :  { %1267 = vmatprep.subr.bf16.mxu1 %v3204_v28  ;;  %1241 = vmatpush2.bf16.msra.mxu0 %v3199_v29  ;;  %v3274_v28 = vld [vmem:[#allocation10 + $0x180] ss:$16 sps:$4 sm:$0xff]   ;;  %v3282_v29 = vld [vmem:[#allocation10 + $0x164] ss:$16 sps:$4 sm:$0xff]  }
 0x163   :  { %1242 = vmatprep.subr.bf16.mxu0 %v3207_v30  ;;  %v3304_v30 = vld [vmem:[#allocation10 + $0x3e0] ss:$16 sps:$4 sm:$0xff]  }
 0x165   :  { %1268 = vmatpush1.bf16.msra.mxu1 %v3202_v31  ;;  %v3306_v31 = vld [vmem:[#allocation10 + $0x3e4] ss:$16 sps:$4 sm:$0xff]  }
 0x166   :  { %1269 = vmatprep.subr.bf16.mxu1 %v3210_v32  ;;  %1243 = vmatpush2.bf16.msra.mxu0 %v3205_v33  ;;  %v3280_v32 = vld [vmem:[#allocation10 + $0x160] ss:$16 sps:$4 sm:$0xff]   ;;  %v3312_v33 = vld [vmem:[#allocation10 + $0x3c4] ss:$16 sps:$4 sm:$0xff]  }
 0x167   :  { %1244 = vmatprep.subr.bf16.mxu0 %v3213_v23  ;;  %v3288_v23 = vld [vmem:[#allocation10 + $0x144] ss:$16 sps:$4 sm:$0xff]  }
 0x169   :  { %1270 = vmatpush1.bf16.msra.mxu1 %v3208_v34  ;;  %v3310_v34 = vld [vmem:[#allocation10 + $0x3c0] ss:$16 sps:$4 sm:$0xff]  }
 0x16a   :  { %1271 = vmatprep.subr.bf16.mxu1 %v3216_v35  ;;  %1245 = vmatpush2.bf16.msra.mxu0 %v3211_v36  ;;  %v3286_v35 = vld [vmem:[#allocation10 + $0x140] ss:$16 sps:$4 sm:$0xff]   ;;  %v3318_v36 = vld [vmem:[#allocation10 + $0x3a4] ss:$16 sps:$4 sm:$0xff]  }
 0x16b   :  { %1246 = vmatprep.subr.bf16.mxu0 %v3219_v37  ;;  %v3294_v37 = vld [vmem:[#allocation10 + $0x124] ss:$16 sps:$4 sm:$0xff]  }
 0x16d   :  { %1272 = vmatpush1.bf16.msra.mxu1 %v3214_v38  ;;  %v3316_v38 = vld [vmem:[#allocation10 + $0x3a0] ss:$16 sps:$4 sm:$0xff]  }
 0x16e   :  { %1273 = vmatprep.subr.bf16.mxu1 %v3222_v39  ;;  %1247 = vmatpush2.bf16.msra.mxu0 %v3217_v42  ;;  %v3292_v39 = vld [vmem:[#allocation10 + $0x120] ss:$16 sps:$4 sm:$0xff]   ;;  %v3324_v42 = vld [vmem:[#allocation10 + $0x384] ss:$16 sps:$4 sm:$0xff]  }
 0x16f   :  { %1248 = vmatprep.subr.bf16.mxu0 %v3225_v43  ;;  %v3300_v43 = vld [vmem:[#allocation10 + $0x104] ss:$16 sps:$4 sm:$0xff]  }
 0x171   :  { %1274 = vmatpush1.bf16.msra.mxu1 %v3220_v44  ;;  %v3322_v44 = vld [vmem:[#allocation10 + $0x380] ss:$16 sps:$4 sm:$0xff]  }
 0x172   :  { %1275 = vmatprep.subr.bf16.mxu1 %v3228_v45  ;;  %1249 = vmatpush2.bf16.msra.mxu0 %v3223_v46  ;;  %v3298_v45 = vld [vmem:[#allocation10 + $0x100] ss:$16 sps:$4 sm:$0xff]   ;;  %v3330_v46 = vld [vmem:[#allocation10 + $0x364] ss:$16 sps:$4 sm:$0xff]  }
 0x173   :  { %1250 = vmatprep.subr.bf16.mxu0 %v3231_v47  ;;  %v3309_v47 = vld [vmem:[#allocation10 + $0xec] ss:$16 sps:$4 sm:$0xff]  }
 0x175   :  { %1276 = vmatpush1.bf16.msra.mxu1 %v3226_v48  ;;  %v3328_v48 = vld [vmem:[#allocation10 + $0x360] ss:$16 sps:$4 sm:$0xff]  }
 0x176   :  { %2100 = vmatprep.subr.bf16.mxu1 %v3234_v49  ;;  %1251 = vmatpush2.bf16.msra.mxu0 %v3229_v50  ;;  %v3336_v49 = vld [vmem:[#allocation10 + $0x344] ss:$16 sps:$4 sm:$0xff]   ;;  %v3334_v50 = vld [vmem:[#allocation10 + $0x340] ss:$16 sps:$4 sm:$0xff]  }
 0x177   :  { %2141 = vmatprep.subr.bf16.mxu0 %v3261_v60 }
 0x178   :  { %1294 = vmatmul.mubr.bf16.vlgmr.msra.gmra.mxu1 %v3705_v52  ;;  %v3265_v52 = vld [vmem:[#allocation10 + $0x2c0] ss:$16 sps:$4 sm:$0xff]  }
 0x179   :  { %2101 = vmatpush1.bf16.msra.mxu1 %v3232_v51  ;;  %1253 = vmatmul.mubr.bf16.vlgmr.msra.gmra.mxu0 %v3716_v14  ;;  %v3291_v14 = vld [vmem:[#allocation10 + $0x244] ss:$16 sps:$4 sm:$0xff]  }
 0x17a   :  { %2102 = vmatprep.subr.bf16.mxu1 %v3237_v53  ;;  %2142 = vmatpush1.bf16.msra.mxu0 %v3259_v59  ;;  %v3342_v51 = vld [vmem:[#allocation10 + $0x324] ss:$16 sps:$4 sm:$0xff]   ;;  %v3340_v53 = vld [vmem:[#allocation10 + $0x320] ss:$16 sps:$4 sm:$0xff]  }
 0x17b   :  { %2143 = vmatprep.subr.bf16.mxu0 %v3267_v0 }
 0x17d   :  { %2103 = vmatpush1.bf16.msra.mxu1 %v3235_v54  ;;  %v3348_v54 = vld [vmem:[#allocation10 + $0x304] ss:$16 sps:$4 sm:$0xff]  }
 0x17e   :  { %2104 = vmatprep.subr.bf16.mxu1 %v3240_v55  ;;  %2144 = vmatpush1.bf16.msra.mxu0 %v3265_v52  ;;  %v3346_v55 = vld [vmem:[#allocation10 + $0x300] ss:$16 sps:$4 sm:$0xff]  }
 0x17f   :  { %2145 = vmatprep.subr.bf16.mxu0 %v3273_v2 }
 0x181   :  { %2105 = vmatpush1.bf16.msra.mxu1 %v3238_v56  ;;  %v3357_v56 = vld [vmem:[#allocation10 + $0x2ec] ss:$16 sps:$4 sm:$0xff]  }
 0x182   :  { %2106 = vmatprep.subr.bf16.mxu1 %v3243_v57  ;;  %2146 = vmatpush1.bf16.msra.mxu0 %v3271_v4 }
 0x183   :  { %2147 = vmatprep.subr.bf16.mxu0 %v3279_v6 }
 0x185   :  { %2107 = vmatpush1.bf16.msra.mxu1 %v3241_v58 }
 0x186   :  { %2108 = vmatprep.subr.bf16.mxu1 %v3246_v62  ;;  %2148 = vmatpush1.bf16.msra.mxu0 %v3277_v8  ;;  %v636_v62 = vld [vmem:[%s3757_s4] sm:$0xf] }
 0x187   :  { %2149 = vmatprep.subr.bf16.mxu0 %v3285_v10  ;;  %v641_v0 = vrot.slane %v636_v62, %v3709_v61  ;;  %v645_v52 = vrot.slane %v636_v62, %v3712_v63 }
 0x189   :  { %2109 = vmatpush1.bf16.msra.mxu1 %v3244_v1 }
 0x18a   :  { %2110 = vmatprep.subr.bf16.mxu1 %v3249_v3  ;;  %2150 = vmatpush1.bf16.msra.mxu0 %v3283_v12  ;;  %v3307_v12 = vld [vmem:[#allocation10 + $0xe8] ss:$16 sps:$4 sm:$0xff]  }
 0x18b   :  { %2151 = vmatprep.subr.bf16.mxu0 %v3291_v14  ;;  %v3315_v14 = vld [vmem:[#allocation10 + $0xcc] ss:$16 sps:$4 sm:$0xff]  }
 0x18d   :  { %2111 = vmatpush1.bf16.msra.mxu1 %v3247_v5 }
 0x18e   :  { %2112 = vmatprep.subr.bf16.mxu1 %v3252_v7  ;;  %2152 = vmatpush1.bf16.msra.mxu0 %v3289_v16  ;;  %v3321_v16 = vld [vmem:[#allocation10 + $0xac] ss:$16 sps:$4 sm:$0xff]  }
 0x18f   :  { %2153 = vmatprep.subr.bf16.mxu0 %v3297_v21  ;;  %v3331_v21 = vld [vmem:[#allocation10 + $0x68] ss:$16 sps:$4 sm:$0xff]  }
 0x191   :  { %2113 = vmatpush1.bf16.msra.mxu1 %v3250_v9 }
 0x192   :  { %2114 = vmatprep.subr.bf16.mxu1 %v3255_v11  ;;  %2154 = vmatpush1.bf16.msra.mxu0 %v3295_v22  ;;  %v3339_v22 = vld [vmem:[#allocation10 + $0x4c] ss:$16 sps:$4 sm:$0xff]  }
 0x193   :  { %2155 = vmatprep.subr.bf16.mxu0 %v3303_v26  ;;  %v3345_v26 = vld [vmem:[#allocation10 + $0x2c] ss:$16 sps:$4 sm:$0xff]  }
 0x195   :  { %2115 = vmatpush1.bf16.msra.mxu1 %v3253_v13 }
 0x196   :  { %2116 = vmatprep.subr.bf16.mxu1 %v3258_v15  ;;  %2156 = vmatpush1.bf16.msra.mxu0 %v3301_v27  ;;  %v3313_v15 = vld [vmem:[#allocation10 + $0xc8] ss:$16 sps:$4 sm:$0xff]   ;;  %v649_v27 = vrot.slane %v636_v62, %v3702_v41 }
 0x197   :  { %2157 = vmatprep.subr.bf16.mxu0 %v3306_v31 }
 0x199   :  { %2117 = vmatpush2.bf16.msra.mxu1 %v3256_v17  ;;  %v3319_v17 = vld [vmem:[#allocation10 + $0xa8] ss:$16 sps:$4 sm:$0xff]  }
 0x19a   :  { %2118 = vmatprep.subr.bf16.mxu1 %v3264_v18  ;;  %2158 = vmatpush2.bf16.msra.mxu0 %v3304_v30  ;;  %v3327_v18 = vld [vmem:[#allocation10 + $0x8c] ss:$16 sps:$4 sm:$0xff]   ;;  %v3343_v30 = vld [vmem:[#allocation10 + $0x28] ss:$16 sps:$4 sm:$0xff]  }
 0x19b   :  { %2159 = vmatprep.subr.bf16.mxu0 %v3312_v33  ;;  %v3351_v33 = vld [vmem:[#allocation10 + $0xc] ss:$16 sps:$4 sm:$0xff]  }
 0x19d   :  { %2119 = vmatpush2.bf16.msra.mxu1 %v3262_v19  ;;  %v3325_v19 = vld [vmem:[#allocation10 + $0x88] ss:$16 sps:$4 sm:$0xff]  }
 0x19e   :  { %2120 = vmatprep.subr.bf16.mxu1 %v3270_v20  ;;  %2160 = vmatpush2.bf16.msra.mxu0 %v3310_v34  ;;  %v3333_v20 = vld [vmem:[#allocation10 + $0x6c] ss:$16 sps:$4 sm:$0xff]  }
 0x19f   :  { %2161 = vmatprep.subr.bf16.mxu0 %v3318_v36 }
 0x1a1   :  { %2121 = vmatpush2.bf16.msra.mxu1 %v3268_v24  ;;  %v3337_v24 = vld [vmem:[#allocation10 + $0x48] ss:$16 sps:$4 sm:$0xff]  }
 0x1a2   :  { %2122 = vmatprep.subr.bf16.mxu1 %v3276_v25  ;;  %2162 = vmatpush2.bf16.msra.mxu0 %v3316_v38  ;;  %v652_v25 = vsub.s32 3, %v3699_v40  ;;  %v3349_v38 = vld [vmem:[#allocation10 + $0x8] ss:$16 sps:$4 sm:$0xff]  }
 0x1a3   :  { %2163 = vmatprep.subr.bf16.mxu0 %v3324_v42 }
 0x1a5   :  { %2123 = vmatpush2.bf16.msra.mxu1 %v3274_v28 }
 0x1a6   :  { %2124 = vmatprep.subr.bf16.mxu1 %v3282_v29  ;;  %2164 = vmatpush2.bf16.msra.mxu0 %v3322_v44  ;;  %v653_v29 = vrot.slane %v636_v62, %v652_v25  ;;  %v3367_v62 = vld [vmem:[#allocation10 + $0x2a8] ss:$16 sps:$4 sm:$0xff]  }
 0x1a7   :  { %2165 = vmatprep.subr.bf16.mxu0 %v3330_v46 }
 0x1a9   :  { %2125 = vmatpush2.bf16.msra.mxu1 %v3280_v32 }
 0x1aa   :  { %2126 = vmatprep.subr.bf16.mxu1 %v3288_v23  ;;  %2166 = vmatpush2.bf16.msra.mxu0 %v3328_v48  ;;  %v3352_v48 = vld [vmem:[#allocation10 + $0x1e8] ss:$16 sps:$4 sm:$0xff]  }
 0x1ab   :  { %2167 = vmatprep.subr.bf16.mxu0 %v3336_v49  ;;  %v3360_v49 = vld [vmem:[#allocation10 + $0x1cc] ss:$16 sps:$4 sm:$0xff]  }
 0x1ad   :  { %2127 = vmatpush2.bf16.msra.mxu1 %v3286_v35 }
 0x1ae   :  { %2128 = vmatprep.subr.bf16.mxu1 %v3294_v37  ;;  %2168 = vmatpush2.bf16.msra.mxu0 %v3334_v50 }
 0x1af   :  { %2169 = vmatprep.subr.bf16.mxu0 %v3342_v51  ;;  %v3355_v51 = vld [vmem:[#allocation10 + $0x2e8] ss:$16 sps:$4 sm:$0xff]  }
 0x1b1   :  { %2129 = vmatpush2.bf16.msra.mxu1 %v3292_v39 }
 0x1b2   :  { %2130 = vmatprep.subr.bf16.mxu1 %v3300_v43  ;;  %2170 = vmatpush2.bf16.msra.mxu0 %v3340_v53  ;;  %v3354_v43 = vld [vmem:[#allocation10 + $0x1ec] ss:$16 sps:$4 sm:$0xff]  }
 0x1b3   :  { %2171 = vmatprep.subr.bf16.mxu0 %v3348_v54  ;;  %v3363_v54 = vld [vmem:[#allocation10 + $0x2cc] ss:$16 sps:$4 sm:$0xff]  }
 0x1b5   :  { %2131 = vmatpush2.bf16.msra.mxu1 %v3298_v45 }
 0x1b6   :  { %2182 = vmatprep.subr.bf16.mxu1 %v3309_v47  ;;  %2172 = vmatpush2.bf16.msra.mxu0 %v3346_v55  ;;  %v3358_v55 = vld [vmem:[#allocation10 + $0x1c8] ss:$16 sps:$4 sm:$0xff]  }
 0x1b7   :  { %2223 = vmatprep.subr.bf16.mxu0 %v3357_v56  ;;  %v3366_v56 = vld [vmem:[#allocation10 + $0x1ac] ss:$16 sps:$4 sm:$0xff]  }
 0x1f9   :  { %v1213_v57 = vpop.f32.mrf.mxu0 }
 0x1fb   :  { %v1215_v58 = vpop.f32.mrf.mxu0 }
 0x1fd   :  { %v1217_v59 = vpop.f32.mrf.mxu0 }
 0x1fe   :  { %v3364_v59 = vld [vmem:[#allocation10 + $0x1a8] ss:$16 sps:$4 sm:$0xff]  }
 0x1ff   :  { %v1218_v60 = vpop.f32.mrf.mxu0 }
 0x200   :  { %v3372_v60 = vld [vmem:[#allocation10 + $0x18c] ss:$16 sps:$4 sm:$0xff]  }
 0x218   :  { %v1172_v1 = vpop.f32.mrf.mxu1 }
 0x219   :  { %v1173_v2 = vadd.f32 %v1172_v1, %v641_v0  ;;  %v3375_v0 = vld [vmem:[#allocation10 + $0x28c] ss:$16 sps:$4 sm:$0xff]  }
 0x21a   :  { %v1174_v3 = vpop.f32.mrf.mxu1  ;;  %v3378_v1 = vld [vmem:[#allocation10 + $0x16c] ss:$16 sps:$4 sm:$0xff]  }
 0x21b   :  { %v1214_v4 = vadd.f32 %v1213_v57, %v1173_v2  ;;  %v1175_v5 = vadd.f32 %v1174_v3, %v645_v52  ;;  %v3361_v57 = vld [vmem:[#allocation10 + $0x2c8] ss:$16 sps:$4 sm:$0xff]   ;;  %v3381_v3 = vld [vmem:[#allocation10 + $0x26c] ss:$16 sps:$4 sm:$0xff]  }
 0x21c   :  { %v1176_v6 = vpop.f32.mrf.mxu1  ;;  %v3370_v52 = vld [vmem:[#allocation10 + $0x188] ss:$16 sps:$4 sm:$0xff]  }
 0x21d   :  { %v1216_v7 = vadd.f32 %v1215_v58, %v1175_v5  ;;  %v1302_v8 = vmax.f32 %v1214_v4, 0.0  ;;  %v3369_v58 = vld [vmem:[#allocation10 + $0x2ac] ss:$16 sps:$4 sm:$0xff]   ;;  %v3373_v2 = vld [vmem:[#allocation10 + $0x288] ss:$16 sps:$4 sm:$0xff]  }
 0x21e   :  { %v1177_v9 = vpop.f32.mrf.mxu1  ;;  %v3376_v4 = vld [vmem:[#allocation10 + $0x168] ss:$16 sps:$4 sm:$0xff]   ;;  %v3384_v5 = vld [vmem:[#allocation10 + $0x14c] ss:$16 sps:$4 sm:$0xff]  }
 0x21f   :  { %v1303_v10 = vmax.f32 %v1216_v7, 0.0  ;;  %v3727_v13 = vpack.c.bf16 %v1302_v8, %v1302_v8  ;;  %v3379_v6 = vld [vmem:[#allocation10 + $0x268] ss:$16 sps:$4 sm:$0xff]   ;;  %v3387_v7 = vld [vmem:[#allocation10 + $0x24c] ss:$16 sps:$4 sm:$0xff]  }
 0x220   :  { %v3382_v8 = vld [vmem:[#allocation10 + $0x148] ss:$16 sps:$4 sm:$0xff]   ;;  %v3390_v9 = vld [vmem:[#allocation10 + $0x12c] ss:$16 sps:$4 sm:$0xff]  }
 0x221   :  { %v1307_v11 = vpack.c.bf16 %v1303_v10, %v1303_v10  ;;  %v3385_v10 = vld [vmem:[#allocation10 + $0x248] ss:$16 sps:$4 sm:$0xff]  }
 0x223   :  { %2132 = vmatprep.mubr.bf16.mxu1 %v1307_v11 }
 0x224   :  { %2133 = vmatmul.mubr.bf16.vlgmr.msra.gmra.mxu1 %v3727_v13 }
 0x225   :  { %2183 = vmatpush1.bf16.msra.mxu1 %v3307_v12  ;;  %2214 = vmatprep.mubr.bf16.mxu1 %v1307_v11  ;;  %v3393_v11 = vld [vmem:[#allocation10 + $0x22c] ss:$16 sps:$4 sm:$0xff]   ;;  %v3388_v12 = vld [vmem:[#allocation10 + $0x128] ss:$16 sps:$4 sm:$0xff]  }
 0x226   :  { %2184 = vmatprep.subr.bf16.mxu1 %v3315_v14  ;;  %v3396_v14 = vld [vmem:[#allocation10 + $0x10c] ss:$16 sps:$4 sm:$0xff]  }
 0x229   :  { %2185 = vmatpush1.bf16.msra.mxu1 %v3313_v15  ;;  %v3391_v15 = vld [vmem:[#allocation10 + $0x228] ss:$16 sps:$4 sm:$0xff]  }
 0x22a   :  { %2186 = vmatprep.subr.bf16.mxu1 %v3321_v16  ;;  %v3399_v16 = vld [vmem:[#allocation10 + $0x20c] ss:$16 sps:$4 sm:$0xff]  }
 0x22d   :  { %2187 = vmatpush1.bf16.msra.mxu1 %v3319_v17  ;;  %v3394_v17 = vld [vmem:[#allocation10 + $0x108] ss:$16 sps:$4 sm:$0xff]  }
 0x22e   :  { %2188 = vmatprep.subr.bf16.mxu1 %v3327_v18  ;;  %v3397_v18 = vld [vmem:[#allocation10 + $0x208] ss:$16 sps:$4 sm:$0xff]  }
 0x231   :  { %2189 = vmatpush1.bf16.msra.mxu1 %v3325_v19  ;;  %v3402_v19 = vld [vmem:[#allocation10 + $0x3ec] ss:$16 sps:$4 sm:$0xff]  }
 0x232   :  { %2190 = vmatprep.subr.bf16.mxu1 %v3333_v20  ;;  %v3400_v20 = vld [vmem:[#allocation10 + $0x3e8] ss:$16 sps:$4 sm:$0xff]  }
 0x235   :  { %2191 = vmatpush1.bf16.msra.mxu1 %v3331_v21  ;;  %v3405_v21 = vld [vmem:[#allocation10 + $0x3cc] ss:$16 sps:$4 sm:$0xff]  }
 0x236   :  { %2192 = vmatprep.subr.bf16.mxu1 %v3339_v22  ;;  %v3403_v22 = vld [vmem:[#allocation10 + $0x3c8] ss:$16 sps:$4 sm:$0xff]  }
 0x238   :  { %v1295_v28 = vpop.f32.mrf.mxu1 }
 0x239   :  { %2193 = vmatpush1.bf16.msra.mxu1 %v3337_v24  ;;  %v1254_v31 = vpop.f32.mrf.mxu0  ;;  %v3408_v24 = vld [vmem:[#allocation10 + $0x3ac] ss:$16 sps:$4 sm:$0xff]  }
 0x23a   :  { %v1297_v32 = vpop.f32.mrf.mxu1  ;;  %2194 = vmatprep.subr.bf16.mxu1 %v3345_v26  ;;  %v1255_v23 = vadd.f32 %v1254_v31, %v649_v27  ;;  %v3424_v26 = vld [vmem:[#allocation11 + $0x78] sm:$0xff]   ;;  %v3427_v31 = vld [vmem:[#allocation11 + $0x30] sm:$0xff]  }
 0x23b   :  { %v1256_v34 = vpop.f32.mrf.mxu0  ;;  %v3425_v27 = vld [vmem:[#allocation11 + $0x38] sm:$0xff]  }
 0x23c   :  { %v1299_v35 = vpop.f32.mrf.mxu1  ;;  %v1296_v36 = vadd.f32 %v1295_v28, %v1255_v23  ;;  %v1257_v37 = vadd.f32 %v1256_v34, %v653_v29  ;;  %v3426_v28 = vld [vmem:[#allocation11 + $0x70] sm:$0xff]   ;;  %v3406_v29 = vld [vmem:[#allocation10 + $0x3a8] ss:$16 sps:$4 sm:$0xff]   ;;  %v3430_v34 = vld [vmem:[#allocation11 + $0x60] sm:$0xff]  }
 0x23d   :  { %2195 = vmatpush1.bf16.msra.mxu1 %v3343_v30  ;;  %v1258_v39 = vpop.f32.mrf.mxu0  ;;  %v3411_v30 = vld [vmem:[#allocation10 + $0x38c] ss:$16 sps:$4 sm:$0xff]   ;;  %v3412_v35 = vld [vmem:[#allocation10 + $0x368] ss:$16 sps:$4 sm:$0xff]  }
 0x23e   :  { %v1300_v42 = vpop.f32.mrf.mxu1  ;;  %2196 = vmatprep.subr.bf16.mxu1 %v3351_v33  ;;  %v1298_v44 = vadd.f32 %v1297_v32, %v1257_v37  ;;  %v1304_v45 = vmax.f32 %v1296_v36, 0.0  ;;  %v3428_v32 = vld [vmem:[#allocation11 + $0x68] sm:$0xff]   ;;  %v3431_v37 = vld [vmem:[#allocation11 + $0x20] sm:$0xff]  }
 0x23f   :  { %v1259_v46 = vpop.f32.mrf.mxu0  ;;  %v3414_v33 = vld [vmem:[#allocation10 + $0x36c] ss:$16 sps:$4 sm:$0xff]   ;;  %v3415_v39 = vld [vmem:[#allocation10 + $0x348] ss:$16 sps:$4 sm:$0xff]  }
 0x240   :  { %v1305_v47 = vmax.f32 %v1298_v44, 0.0  ;;  %v3734_v53 = vpack.c.bf16 %v1304_v45, %v1304_v45  ;;  %v3429_v23 = vld [vmem:[#allocation11 + $0x28] sm:$0xff]   ;;  %v3434_v44 = vld [vmem:[#allocation11 + $0x50] sm:$0xff]  }
 0x241   :  { %2197 = vmatpush1.bf16.msra.mxu1 %v3349_v38  ;;  %v3417_v36 = vld [vmem:[#allocation10 + $0x34c] ss:$16 sps:$4 sm:$0xff]   ;;  %v3418_v45 = vld [vmem:[#allocation10 + $0x328] ss:$16 sps:$4 sm:$0xff]  }
 0x242   :  { %2198 = vmatprep.subr.bf16.mxu1 %v3354_v43  ;;  %v1309_v50 = vpack.c.bf16 %v1305_v47, %v1305_v47  ;;  %v3432_v38 = vld [vmem:[#allocation11 + $0x58] sm:$0xff]   ;;  %v3435_v47 = vld [vmem:[#allocation11 + $0x10] sm:$0xff]  }
 0x243   :  { %v3420_v42 = vld [vmem:[#allocation10 + $0x32c] ss:$16 sps:$4 sm:$0xff]  }
 0x244   :  { %2173 = vmatprep.mubr.bf16.mxu0 %v1309_v50  ;;  %v3433_v43 = vld [vmem:[#allocation11 + $0x18] sm:$0xff]  }
 0x245   :  { %2199 = vmatpush2.bf16.msra.mxu1 %v3352_v48  ;;  %2174 = vmatmul.mubr.bf16.vlgmr.msra.gmra.mxu0 %v3734_v53  ;;  %v3423_v46 = vld [vmem:[#allocation10 + $0x30c] ss:$16 sps:$4 sm:$0xff]   ;;  %v3421_v48 = vld [vmem:[#allocation10 + $0x308] ss:$16 sps:$4 sm:$0xff]  }
 0x246   :  { %2200 = vmatprep.subr.bf16.mxu1 %v3360_v49  ;;  %2224 = vmatpush1.bf16.msra.mxu0 %v3355_v51  ;;  %v3436_v49 = vld [vmem:[#allocation11 + $0x48] sm:$0xff]   ;;  %v3438_v51 = vld [vmem:[#allocation11 + $0x40] sm:$0xff]  }
 0x247   :  { %2255 = vmatprep.mubr.bf16.mxu0 %v1309_v50  ;;  %2225 = vmatprep.subr.bf16.mxu0 %v3363_v54  ;;  %v3437_v50 = vld [vmem:[#allocation11 + $0x8] sm:$0xff]   ;;  %v3439_v54 = vld [vmem:[#allocation11] sm:$0xff]  }
 0x249   :  { %2201 = vmatpush2.bf16.msra.mxu1 %v3358_v55  ;;  %v3440_v55 = vld [vmem:[#allocation11 + $0xf8] sm:$0xff]  }
 0x24a   :  { %2202 = vmatprep.subr.bf16.mxu1 %v3366_v56  ;;  %2226 = vmatpush1.bf16.msra.mxu0 %v3361_v57  ;;  %v3441_v56 = vld [vmem:[#allocation11 + $0xb8] sm:$0xff]   ;;  %v3442_v57 = vld [vmem:[#allocation11 + $0xf0] sm:$0xff]  }
 0x24b   :  { %2227 = vmatprep.subr.bf16.mxu0 %v3369_v58  ;;  %v3443_v58 = vld [vmem:[#allocation11 + $0xb0] sm:$0xff]  }
 0x24d   :  { %2203 = vmatpush2.bf16.msra.mxu1 %v3364_v59  ;;  %v3444_v59 = vld [vmem:[#allocation11 + $0xe8] sm:$0xff]  }
 0x24e   :  { %2204 = vmatprep.subr.bf16.mxu1 %v3372_v60  ;;  %2228 = vmatpush1.bf16.msra.mxu0 %v3367_v62  ;;  %v3445_v60 = vld [vmem:[#allocation11 + $0xa8] sm:$0xff]   ;;  %v3447_v62 = vld [vmem:[#allocation11 + $0xa0] sm:$0xff]  }
 0x24f   :  { %2229 = vmatprep.subr.bf16.mxu0 %v3375_v0  ;;  %v3448_v0 = vld [vmem:[#allocation11 + $0xd8] sm:$0xff]  }
 0x251   :  { %2205 = vmatpush2.bf16.msra.mxu1 %v3370_v52  ;;  %v3449_v52 = vld [vmem:[#allocation11 + $0x98] sm:$0xff]  }
 0x252   :  { %2206 = vmatprep.subr.bf16.mxu1 %v3378_v1  ;;  %2230 = vmatpush1.bf16.msra.mxu0 %v3373_v2  ;;  %v3450_v1 = vld [vmem:[#allocation11 + $0xd0] sm:$0xff]  }
 0x253   :  { %2231 = vmatprep.subr.bf16.mxu0 %v3381_v3  ;;  %v3451_v2 = vld [vmem:[#allocation11 + $0x90] sm:$0xff]   ;;  %v3452_v3 = vld [vmem:[#allocation11 + $0xc8] sm:$0xff]  }
 0x255   :  { %2207 = vmatpush2.bf16.msra.mxu1 %v3376_v4  ;;  %v3453_v4 = vld [vmem:[#allocation11 + $0x88] sm:$0xff]  }
 0x256   :  { %2208 = vmatprep.subr.bf16.mxu1 %v3384_v5  ;;  %2232 = vmatpush1.bf16.msra.mxu0 %v3379_v6  ;;  %v3454_v5 = vld [vmem:[#allocation11 + $0xc0] sm:$0xff]  }
 0x257   :  { %2233 = vmatprep.subr.bf16.mxu0 %v3387_v7  ;;  %v3455_v6 = vld [vmem:[#allocation11 + $0x80] sm:$0xff]  }
 0x259   :  { %2209 = vmatpush2.bf16.msra.mxu1 %v3382_v8 }
 0x25a   :  { %2210 = vmatprep.subr.bf16.mxu1 %v3390_v9  ;;  %2234 = vmatpush1.bf16.msra.mxu0 %v3385_v10 }
 0x25b   :  { %2235 = vmatprep.subr.bf16.mxu0 %v3393_v11  ;;  %v1438_v11 = vld [vmem:[%s3759_s6] sm:$0xf] }
 0x25d   :  { %2211 = vmatpush2.bf16.msra.mxu1 %v3388_v12  ;;  %v1443_v12 = vrot.slane %v1438_v11, %v3709_v61 }
 0x25e   :  { %2212 = vmatprep.subr.bf16.mxu1 %v3396_v14  ;;  %2236 = vmatpush1.bf16.msra.mxu0 %v3391_v15  ;;  %v1447_v14 = vrot.slane %v1438_v11, %v3712_v63  ;;  %v1451_v63 = vrot.slane %v1438_v11, %v3702_v41 }
 0x25f   :  { %2237 = vmatprep.subr.bf16.mxu0 %v3399_v16 }
 0x261   :  { %2213 = vmatpush2.bf16.msra.mxu1 %v3394_v17 }
 0x262   :  { %2238 = vmatpush1.bf16.msra.mxu0 %v3397_v18  ;;  %2966 = vmatprep.subr.bf16.mxu1 %v3424_v26 }
 0x263   :  { %2239 = vmatprep.subr.bf16.mxu0 %v3402_v19 }
 0x264   :  { %2215 = vmatmul.mubr.bf16.vlgmr.msra.gmra.mxu1 %v3727_v13  ;;  %v3409_v13 = vld [vmem:[#allocation10 + $0x388] ss:$16 sps:$4 sm:$0xff]  }
 0x265   :  { %2967 = vmatpush3.bf16.msra.mxu1 %v3425_v27 }
 0x266   :  { %2240 = vmatpush2.bf16.msra.mxu0 %v3400_v20  ;;  %2968 = vmatprep.subr.bf16.mxu1 %v3426_v28 }
 0x267   :  { %2241 = vmatprep.subr.bf16.mxu0 %v3405_v21 }
 0x269   :  { %2969 = vmatpush3.bf16.msra.mxu1 %v3427_v31 }
 0x26a   :  { %2242 = vmatpush2.bf16.msra.mxu0 %v3403_v22  ;;  %2970 = vmatprep.subr.bf16.mxu1 %v3428_v32  ;;  %v1455_v32 = vrot.slane %v1438_v11, %v652_v25  ;;  %v2911_v25 = vld [vmem:[%s3761_s8] ss:$0 sm:$0xff] }
 0x26b   :  { %2243 = vmatprep.subr.bf16.mxu0 %v3408_v24 }
 0x26d   :  { %2971 = vmatpush3.bf16.msra.mxu1 %v3429_v23 }
 0x26e   :  { %2244 = vmatpush2.bf16.msra.mxu0 %v3406_v29  ;;  %2972 = vmatprep.subr.bf16.mxu1 %v3430_v34 }
 0x26f   :  { %2245 = vmatprep.subr.bf16.mxu0 %v3411_v30 }
 0x271   :  { %2973 = vmatpush3.bf16.msra.mxu1 %v3431_v37 }
 0x272   :  { %2246 = vmatpush2.bf16.msra.mxu0 %v3409_v13  ;;  %2974 = vmatprep.subr.bf16.mxu1 %v3432_v38 }
 0x273   :  { %2247 = vmatprep.subr.bf16.mxu0 %v3414_v33 }
 0x275   :  { %2975 = vmatpush3.bf16.msra.mxu1 %v3433_v43 }
 0x276   :  { %2248 = vmatpush2.bf16.msra.mxu0 %v3412_v35  ;;  %2976 = vmatprep.subr.bf16.mxu1 %v3434_v44 }
 0x277   :  { %2249 = vmatprep.subr.bf16.mxu0 %v3417_v36 }
 0x279   :  { %2977 = vmatpush3.bf16.msra.mxu1 %v3435_v47 }
 0x27a   :  { %2250 = vmatpush2.bf16.msra.mxu0 %v3415_v39  ;;  %2978 = vmatprep.subr.bf16.mxu1 %v3436_v49 }
 0x27b   :  { %2251 = vmatprep.subr.bf16.mxu0 %v3420_v42 }
 0x27d   :  { %2979 = vmatpush3.bf16.msra.mxu1 %v3437_v50 }
 0x27e   :  { %2252 = vmatpush2.bf16.msra.mxu0 %v3418_v45  ;;  %2980 = vmatprep.subr.bf16.mxu1 %v3438_v51 }
 0x27f   :  { %2253 = vmatprep.subr.bf16.mxu0 %v3423_v46 }
 0x281   :  { %2981 = vmatpush3.bf16.msra.mxu1 %v3439_v54 }
 0x282   :  { %2254 = vmatpush2.bf16.msra.mxu0 %v3421_v48 }
 0x283   :  { %2988 = vmatprep.subr.bf16.mxu0 %v3440_v55 }
 0x285   :  { %2256 = vmatmul.mubr.bf16.vlgmr.msra.gmra.mxu0 %v3734_v53  ;;  %v3446_v53 = vld [vmem:[#allocation11 + $0xe0] sm:$0xff]  }
 0x286   :  { %2989 = vmatpush3.bf16.msra.mxu0 %v3441_v56 }
 0x287   :  { %2990 = vmatprep.subr.bf16.mxu0 %v3442_v57 }
 0x28a   :  { %2991 = vmatpush3.bf16.msra.mxu0 %v3443_v58 }
 0x28b   :  { %2992 = vmatprep.subr.bf16.mxu0 %v3444_v59 }
 0x28e   :  { %2993 = vmatpush3.bf16.msra.mxu0 %v3445_v60 }
 0x28f   :  { %2994 = vmatprep.subr.bf16.mxu0 %v3446_v53 }
 0x292   :  { %2995 = vmatpush3.bf16.msra.mxu0 %v3447_v62 }
 0x293   :  { %2996 = vmatprep.subr.bf16.mxu0 %v3448_v0 }
 0x296   :  { %2997 = vmatpush3.bf16.msra.mxu0 %v3449_v52 }
 0x297   :  { %2998 = vmatprep.subr.bf16.mxu0 %v3450_v1 }
 0x29a   :  { %2999 = vmatpush3.bf16.msra.mxu0 %v3451_v2 }
 0x29b   :  { %3000 = vmatprep.subr.bf16.mxu0 %v3452_v3 }
 0x29e   :  { %3001 = vmatpush3.bf16.msra.mxu0 %v3453_v4 }
 0x29f   :  { %3002 = vmatprep.subr.bf16.mxu0 %v3454_v5 }
 0x2a2   :  { %3003 = vmatpush3.bf16.msra.mxu0 %v3455_v6 }
 0x2e4   :  { %v2134_v7 = vpop.f32.mrf.mxu1 }
 0x2e5   :  { %v2135_v15 = vadd.f32 %v2134_v7, %v1443_v12 }
 0x2e6   :  { %v2136_v8 = vpop.f32.mrf.mxu1 }
 0x2e7   :  { %v2137_v17 = vadd.f32 %v2136_v8, %v1447_v14 }
 0x2e8   :  { %v2138_v9 = vpop.f32.mrf.mxu1 }
 0x2ea   :  { %v2139_v10 = vpop.f32.mrf.mxu1 }
 0x305   :  { %v2175_v16 = vpop.f32.mrf.mxu0 }
 0x306   :  { %v2176_v18 = vadd.f32 %v2175_v16, %v2135_v15 }
 0x307   :  { %v2177_v19 = vpop.f32.mrf.mxu0 }
 0x308   :  { %v2178_v20 = vadd.f32 %v2177_v19, %v2137_v17  ;;  %v2264_v21 = vmax.f32 %v2176_v18, 0.0 }
 0x309   :  { %v2179_v22 = vpop.f32.mrf.mxu0 }
 0x30a   :  { %v2265_v24 = vmax.f32 %v2178_v20, 0.0  ;;  %v2268_v28 = vpack.c.bf16 %v2264_v21, %v2264_v21 }
 0x30b   :  { %v2180_v26 = vpop.f32.mrf.mxu0 }
 0x30c   :  { %v2269_v27 = vpack.c.bf16 %v2265_v24, %v2265_v24 }
 0x30e   :  { %2567 = vmatprep.mubr.bf16.mxu1 %v2269_v27 }
 0x30f   :  { %2568 = vmatmul.mubr.bf16.vlgmr.msra.gmra.mxu1 %v2268_v28 }
 0x324   :  { %v2216_v29 = vpop.f32.mrf.mxu1 }
 0x325   :  { %v2217_v13 = vadd.f32 %v2216_v29, %v1451_v63 }
 0x326   :  { %v2218_v30 = vpop.f32.mrf.mxu1 }
 0x327   :  { %v2219_v23 = vadd.f32 %v2218_v30, %v1455_v32 }
 0x328   :  { %v2220_v31 = vpop.f32.mrf.mxu1 }
 0x32a   :  { %v2221_v61 = vpop.f32.mrf.mxu1 }
 0x345   :  { %v2257_v33 = vpop.f32.mrf.mxu0 }
 0x346   :  { %v2258_v34 = vadd.f32 %v2257_v33, %v2217_v13 }
 0x347   :  { %v2259_v35 = vpop.f32.mrf.mxu0 }
 0x348   :  { %v2260_v36 = vadd.f32 %v2259_v35, %v2219_v23  ;;  %v2266_v37 = vmax.f32 %v2258_v34, 0.0 }
 0x349   :  { %v2261_v38 = vpop.f32.mrf.mxu0 }
 0x34a   :  { %v2267_v39 = vmax.f32 %v2260_v36, 0.0  ;;  %v2270_v44 = vpack.c.bf16 %v2266_v37, %v2266_v37 }
 0x34b   :  { %v2262_v42 = vpop.f32.mrf.mxu0 }
 0x34c   :  { %v2271_v43 = vpack.c.bf16 %v2267_v39, %v2267_v39 }
 0x34e   :  { %2607 = vmatprep.mubr.bf16.mxu0 %v2271_v43 }
 0x34f   :  { %2608 = vmatmul.mubr.bf16.vlgmr.msra.gmra.mxu0 %v2270_v44 }
 0x3cf   :  { %v2982_v45 = vpop.f32.mrf.mxu1 }
 0x3d1   :  { %v2983_v46 = vpop.f32.mrf.mxu1 }
 0x3d2   :  { %v2984_v40 = vadd.f32 %v2983_v46, %v2982_v45 }
 0x3d3   :  { %v2985_v41 = vpop.f32.mrf.mxu1 }
 0x3d4   :  { %v2570_v50 = vadd.f32 %v2984_v40, %v2911_v25 }
 0x3d5   :  { %v2986_v47 = vpop.f32.mrf.mxu1 }
 0x40f   :  { %v3004_v48 = vpop.f32.mrf.mxu0 }
 0x411   :  { %v3005_v49 = vpop.f32.mrf.mxu0 }
 0x412   :  { %v3006_v51 = vadd.f32 %v3005_v49, %v3004_v48 }
 0x413   :  { %v3007_v54 = vpop.f32.mrf.mxu0 }
 0x414   :  { %v2610_v55 = vadd.f32 %v3006_v51, %v2570_v50 }
 0x415   :  { %v3008_v56 = vpop.f32.mrf.mxu0 }
 0x416   :  { %v2615_v57 = vsub.f32 0.0, %v2610_v55 }
 0x418   :  { %v2616_v58 = vmul.f32 1.442695, %v2615_v57 }
 0x41a   :  { %3456 = vpow2.f32 %v2616_v58 }
 0x427   :  { %v3457_v59 = vpop.eup %3456 }
 0x428   :  { %v2618_v60 = vadd.f32 1.0, %v3457_v59 }
 0x42a   :  { %3458 = vrcp.f32 %v2618_v60 }
 0x437   :  { %v3459_v53 = vpop.eup %3458 }
 0x438   :  { %2620 = vst [vmem:[#allocation13] sm:$0xff] %v3459_v53 }
 0x439   :  { %3591 = shalt.err (!%p3588_p6)
}
 0x43a   :  { %2630 = dma.vmem_to_hbm [thread:$0]  %s2628_s23, 128, %s3762_s9, [#allocation4]  }
 0x43b   :  { %3608 = dma.done.wait [#allocation4], 128  }
 0x43c   :  { %3609 = vsyncadd [#allocation4], 4294967168 }
 0x43d   :  { %2634 = vsyncpa [#allocation3], 1 }
 0x43e   :  { %2635 = vsyncpa [#allocation6], 1 }
 0x43f   :  { %2636 = vsyncpa [#allocation9], 1 }
 0x440   :  { %2637 = vsyncpa [#allocation12], 1 }
 0x441   :  { %2638 = vsyncpa [#allocation4], 1 }

</bundles_post_ra>
